<compile_context>
chip_gen: v7x
topology: tpu7x:2x2x1
jax: 0.10.0
libtpu: 0.0.40
codegen_flags: <defaults>
</compile_context>

<pallas_src>
import functools

import jax
import jax.numpy as jnp
from jax.experimental import pallas as pl
from jax.experimental.pallas import tpu as pltpu


# ---------------------------------------------------------------------------
# Fused group kernel
# ---------------------------------------------------------------------------
def _group_kernel(x_ref, w1_ref, b1_ref, w2_ref, b2_ref, wt_ref, bt_ref,
                  o_ref, act_ref, mid_ref,
                  *, H, W, K, n_resblocks, res_scale):
    """Fused ResidualGroup: [conv->ReLU->conv->*rs->+x] * R, conv, *rs, +x0.

    Layout: activations live in a flat padded frame of length L = Hp*Wp on the
    lane axis (channels on sublanes).  act_ref/mid_ref are (C, 2*G + L) with
    G = p*Wp + p guard lanes on each side so every tap shift is an in-bounds
    lane-offset load.  Border of the frame is kept zero (= SAME padding).
    """
    p = K // 2
    Wp = W + 2 * p
    Hp = H + 2 * p
    L = Hp * Wp
    G = p * Wp + p

    # Interior mask over the flat padded frame (True on the H*W real pixels).
    col = jax.lax.broadcasted_iota(jnp.int32, (1, L), 1)
    interior = col < 0                                   # all-False start
    for y in range(p, p + H):
        s = y * Wp + p
        interior = interior | ((col >= s) & (col < s + W))

    # Zero scratches (guards + padding border), then place the input rows.
    act_ref[...] = jnp.zeros(act_ref.shape, act_ref.dtype)
    mid_ref[...] = jnp.zeros(mid_ref.shape, mid_ref.dtype)
    xc = x_ref[0].astype(jnp.float32)                    # (C, H*W) lane-dense
    for y in range(H):
        act_ref[:, pl.ds(G + (p + y) * Wp + p, W)] = xc[:, y * W:(y + 1) * W]

    def conv(src_ref, wv, bv):
        # Single dot with contraction K*K*C: stack the K*K shifted tap views
        # (lane-offset ref loads -> no value-level relayout slices).
        taps = [src_ref[:, pl.ds(kh * Wp + kw, L)]
                for kh in range(K) for kw in range(K)]
        stacked = jnp.concatenate(taps, axis=0)          # (K*K*C, L)
        return jnp.dot(wv, stacked,
                       preferred_element_type=jnp.float32) + bv  # (C, L)

    # RCAB blocks (unrolled; activation stays resident in VMEM).
    for r in range(n_resblocks):
        h = conv(act_ref, w1_ref[r], b1_ref[r])
        mid_ref[:, pl.ds(G, L)] = jnp.where(interior,
                                            jnp.maximum(h, 0.0), 0.0)
        res = conv(mid_ref, w2_ref[r], b2_ref[r])
        new_act = res * res_scale + act_ref[:, pl.ds(G, L)]
        act_ref[:, pl.ds(G, L)] = jnp.where(interior, new_act, 0.0)

    # Group tail: conv -> *res_scale -> + group input, one dense output store.
    rt = conv(act_ref, wt_ref[...], bt_ref[...])         # (C, L)
    rows = [rt[:, (p + y) * Wp + p:(p + y) * Wp + p + W] for y in range(H)]
    out_c = jnp.concatenate(rows, axis=-1) * res_scale + xc   # (C, H*W)
    o_ref[0] = out_c.astype(o_ref.dtype)


# ---------------------------------------------------------------------------
# Wrapper: weight flattening + single pallas_call (grid over batch)
# ---------------------------------------------------------------------------
def residual_group_forward(x_nchw, params, *, K, res_scale):
    """ResidualGroup.forward; input/output in PyTorch NCHW convention."""
    N, C, H, W = x_nchw.shape
    assert K % 2 == 1, "SAME padding with p = K//2 requires odd kernel size"
    p = K // 2
    Hp, Wp = H + 2 * p, W + 2 * p
    L = Hp * Wp
    G = p * Wp + p
    LBUF = L + 2 * G
    R = len(params["rcabs"])

    def flat_w(w):  # HWIO (K,K,Ci,Co) -> (Co, K*K*Ci), tap-major then channel
        return jnp.transpose(w, (3, 0, 1, 2)).reshape(w.shape[3], -1)

    w1 = jnp.stack([flat_w(w) for (w, _, _, _) in params["rcabs"]])     # (R,C,KKC)
    b1 = jnp.stack([b.reshape(-1, 1) for (_, b, _, _) in params["rcabs"]])
    w2 = jnp.stack([flat_w(w) for (_, _, w, _) in params["rcabs"]])
    b2 = jnp.stack([b.reshape(-1, 1) for (_, _, _, b) in params["rcabs"]])
    wt = flat_w(params["tail_w"])                                       # (C,KKC)
    bt = params["tail_b"].reshape(-1, 1)                                # (C,1)

    x_flat = x_nchw.reshape(N, C, H * W)   # lane-dense, layout-free reshape

    kern = functools.partial(_group_kernel, H=H, W=W, K=K,
                             n_resblocks=R, res_scale=res_scale)
    out_flat = pl.pallas_call(
        kern,
        out_shape=jax.ShapeDtypeStruct((N, C, H * W), x_nchw.dtype),
        grid_spec=pltpu.PrefetchScalarGridSpec(
            num_scalar_prefetch=0,
            grid=(N,),
            in_specs=[
                pl.BlockSpec((1, C, H * W), lambda n: (n, 0, 0)),
                pl.BlockSpec((R, C, K * K * C), lambda n: (0, 0, 0)),
                pl.BlockSpec((R, C, 1), lambda n: (0, 0, 0)),
                pl.BlockSpec((R, C, K * K * C), lambda n: (0, 0, 0)),
                pl.BlockSpec((R, C, 1), lambda n: (0, 0, 0)),
                pl.BlockSpec((C, K * K * C), lambda n: (0, 0)),
                pl.BlockSpec((C, 1), lambda n: (0, 0)),
            ],
            out_specs=pl.BlockSpec((1, C, H * W), lambda n: (n, 0, 0)),
            scratch_shapes=[pltpu.VMEM((C, LBUF), jnp.float32),
                            pltpu.VMEM((C, LBUF), jnp.float32)],
        ),
        compiler_params=pltpu.CompilerParams(
            dimension_semantics=("parallel",)),
    )(x_flat, w1, b1, w2, b2, wt, bt)

    return out_flat.reshape(N, C, H, W)


# ---------------------------------------------------------------------------
# Pure-JAX reference (for correctness check) — NCHW throughout
# ---------------------------------------------------------------------------
def _conv_ref(x, w, b):
    y = jax.lax.conv_general_dilated(
        x, w, window_strides=(1, 1), padding="SAME",
        dimension_numbers=("NCHW", "HWIO", "NCHW"))
    return y + b.reshape(1, -1, 1, 1)


def residual_group_ref(x, params, *, K, res_scale):
    y = x
    for (w1, b1, w2, b2) in params["rcabs"]:
        h = jnp.maximum(_conv_ref(y, w1, b1), 0.0)
        y = _conv_ref(h, w2, b2) * res_scale + y
    return _conv_ref(y, params["tail_w"], params["tail_b"]) * res_scale + x


# ---------------------------------------------------------------------------
# Deterministic parameter init
# ---------------------------------------------------------------------------
def init_params(key, n_feat, K, n_resblocks):
    params = {"rcabs": []}
    for _ in range(n_resblocks):
        key, k1, k2, k3, k4 = jax.random.split(key, 5)
        w1 = 0.05 * jax.random.normal(k1, (K, K, n_feat, n_feat), jnp.float32)
        b1 = 0.05 * jax.random.normal(k2, (1, n_feat), jnp.float32)
        w2 = 0.05 * jax.random.normal(k3, (K, K, n_feat, n_feat), jnp.float32)
        b2 = 0.05 * jax.random.normal(k4, (1, n_feat), jnp.float32)
        params["rcabs"].append((w1, b1, w2, b2))
    key, k5, k6 = jax.random.split(key, 3)
    params["tail_w"] = 0.05 * jax.random.normal(
        k5, (K, K, n_feat, n_feat), jnp.float32)
    params["tail_b"] = 0.05 * jax.random.normal(k6, (1, n_feat), jnp.float32)
    return params


if __name__ == "__main__":
    # Small, ResidualGroup-consistent config.
    N, n_feat, H, W = 2, 8, 16, 16
    kernel_size = 3
    n_resblocks = 2
    res_scale = 0.1

    key = jax.random.PRNGKey(0)
    key, kx = jax.random.split(key)
    x = jax.random.normal(kx, (N, n_feat, H, W), jnp.float32)  # NCHW like torch

    params = init_params(key, n_feat, kernel_size, n_resblocks)

    out = residual_group_forward(x, params, K=kernel_size, res_scale=res_scale)
    out = jax.block_until_ready(out)

    ref = residual_group_ref(x, params, K=kernel_size, res_scale=res_scale)
    assert out.shape == x.shape and out.dtype == x.dtype
    assert jnp.allclose(out, ref, atol=1e-4, rtol=1e-4), (
        float(jnp.max(jnp.abs(out - ref))))

    print("KERNEL_OK")
</pallas_src>

<mosaic_0001>
module attributes {stable_mosaic.version = 11 : i64} {
  func.func @_group_kernel(%arg0: i32, %arg1: memref<1x8x256xf32, #tpu.memory_space<vmem>>, %arg2: memref<2x8x72xf32, #tpu.memory_space<vmem>>, %arg3: memref<2x8x1xf32, #tpu.memory_space<vmem>>, %arg4: memref<2x8x72xf32, #tpu.memory_space<vmem>>, %arg5: memref<2x8x1xf32, #tpu.memory_space<vmem>>, %arg6: memref<8x72xf32, #tpu.memory_space<vmem>>, %arg7: memref<8x1xf32, #tpu.memory_space<vmem>>, %arg8: memref<1x8x256xf32, #tpu.memory_space<vmem>>, %arg9: memref<8x362xf32, #tpu.memory_space<vmem>>, %arg10: memref<8x362xf32, #tpu.memory_space<vmem>>) attributes {dimension_semantics = [#tpu.dimension_semantics<parallel>], iteration_bounds = array<i64: 2>, scalar_prefetch = 0 : i64, scratch_operands = 2 : i64, tpu.core_type = #tpu.core_type<tc>, window_params = [{transform_indices = @transform_0, window_bounds = array<i64: 1, 8, 256>}, {pipeline_mode = #tpu.pipeline_mode<synchronous>, transform_indices = @transform_1, window_bounds = array<i64: 2, 8, 72>}, {pipeline_mode = #tpu.pipeline_mode<synchronous>, transform_indices = @transform_2, window_bounds = array<i64: 2, 8, 1>}, {pipeline_mode = #tpu.pipeline_mode<synchronous>, transform_indices = @transform_3, window_bounds = array<i64: 2, 8, 72>}, {pipeline_mode = #tpu.pipeline_mode<synchronous>, transform_indices = @transform_4, window_bounds = array<i64: 2, 8, 1>}, {pipeline_mode = #tpu.pipeline_mode<synchronous>, transform_indices = @transform_5, window_bounds = array<i64: 8, 72>}, {pipeline_mode = #tpu.pipeline_mode<synchronous>, transform_indices = @transform_6, window_bounds = array<i64: 8, 1>}, {transform_indices = @transform_7, window_bounds = array<i64: 1, 8, 256>}]} {
    %0 = tpu.iota {dimensions = array<i32: 1>} : vector<1x324xi32>
    %c0_i32 = arith.constant 0 : i32
    %1 = vector.broadcast %c0_i32 : i32 to vector<1x324xi32>
    %2 = arith.cmpi slt, %0, %1 : vector<1x324xi32>
    %c19_i32 = arith.constant 19 : i32
    %3 = vector.broadcast %c19_i32 : i32 to vector<1x324xi32>
    %4 = arith.cmpi sge, %0, %3 : vector<1x324xi32>
    %c35_i32 = arith.constant 35 : i32
    %5 = vector.broadcast %c35_i32 : i32 to vector<1x324xi32>
    %6 = arith.cmpi slt, %0, %5 : vector<1x324xi32>
    %7 = arith.andi %4, %6 : vector<1x324xi1>
    %8 = arith.ori %2, %7 : vector<1x324xi1>
    %c37_i32 = arith.constant 37 : i32
    %9 = vector.broadcast %c37_i32 : i32 to vector<1x324xi32>
    %10 = arith.cmpi sge, %0, %9 : vector<1x324xi32>
    %c53_i32 = arith.constant 53 : i32
    %11 = vector.broadcast %c53_i32 : i32 to vector<1x324xi32>
    %12 = arith.cmpi slt, %0, %11 : vector<1x324xi32>
    %13 = arith.andi %10, %12 : vector<1x324xi1>
    %14 = arith.ori %8, %13 : vector<1x324xi1>
    %c55_i32 = arith.constant 55 : i32
    %15 = vector.broadcast %c55_i32 : i32 to vector<1x324xi32>
    %16 = arith.cmpi sge, %0, %15 : vector<1x324xi32>
    %c71_i32 = arith.constant 71 : i32
    %17 = vector.broadcast %c71_i32 : i32 to vector<1x324xi32>
    %18 = arith.cmpi slt, %0, %17 : vector<1x324xi32>
    %19 = arith.andi %16, %18 : vector<1x324xi1>
    %20 = arith.ori %14, %19 : vector<1x324xi1>
    %c73_i32 = arith.constant 73 : i32
    %21 = vector.broadcast %c73_i32 : i32 to vector<1x324xi32>
    %22 = arith.cmpi sge, %0, %21 : vector<1x324xi32>
    %c89_i32 = arith.constant 89 : i32
    %23 = vector.broadcast %c89_i32 : i32 to vector<1x324xi32>
    %24 = arith.cmpi slt, %0, %23 : vector<1x324xi32>
    %25 = arith.andi %22, %24 : vector<1x324xi1>
    %26 = arith.ori %20, %25 : vector<1x324xi1>
    %c91_i32 = arith.constant 91 : i32
    %27 = vector.broadcast %c91_i32 : i32 to vector<1x324xi32>
    %28 = arith.cmpi sge, %0, %27 : vector<1x324xi32>
    %c107_i32 = arith.constant 107 : i32
    %29 = vector.broadcast %c107_i32 : i32 to vector<1x324xi32>
    %30 = arith.cmpi slt, %0, %29 : vector<1x324xi32>
    %31 = arith.andi %28, %30 : vector<1x324xi1>
    %32 = arith.ori %26, %31 : vector<1x324xi1>
    %c109_i32 = arith.constant 109 : i32
    %33 = vector.broadcast %c109_i32 : i32 to vector<1x324xi32>
    %34 = arith.cmpi sge, %0, %33 : vector<1x324xi32>
    %c125_i32 = arith.constant 125 : i32
    %35 = vector.broadcast %c125_i32 : i32 to vector<1x324xi32>
    %36 = arith.cmpi slt, %0, %35 : vector<1x324xi32>
    %37 = arith.andi %34, %36 : vector<1x324xi1>
    %38 = arith.ori %32, %37 : vector<1x324xi1>
    %c127_i32 = arith.constant 127 : i32
    %39 = vector.broadcast %c127_i32 : i32 to vector<1x324xi32>
    %40 = arith.cmpi sge, %0, %39 : vector<1x324xi32>
    %c143_i32 = arith.constant 143 : i32
    %41 = vector.broadcast %c143_i32 : i32 to vector<1x324xi32>
    %42 = arith.cmpi slt, %0, %41 : vector<1x324xi32>
    %43 = arith.andi %40, %42 : vector<1x324xi1>
    %44 = arith.ori %38, %43 : vector<1x324xi1>
    %c145_i32 = arith.constant 145 : i32
    %45 = vector.broadcast %c145_i32 : i32 to vector<1x324xi32>
    %46 = arith.cmpi sge, %0, %45 : vector<1x324xi32>
    %c161_i32 = arith.constant 161 : i32
    %47 = vector.broadcast %c161_i32 : i32 to vector<1x324xi32>
    %48 = arith.cmpi slt, %0, %47 : vector<1x324xi32>
    %49 = arith.andi %46, %48 : vector<1x324xi1>
    %50 = arith.ori %44, %49 : vector<1x324xi1>
    %c163_i32 = arith.constant 163 : i32
    %51 = vector.broadcast %c163_i32 : i32 to vector<1x324xi32>
    %52 = arith.cmpi sge, %0, %51 : vector<1x324xi32>
    %c179_i32 = arith.constant 179 : i32
    %53 = vector.broadcast %c179_i32 : i32 to vector<1x324xi32>
    %54 = arith.cmpi slt, %0, %53 : vector<1x324xi32>
    %55 = arith.andi %52, %54 : vector<1x324xi1>
    %56 = arith.ori %50, %55 : vector<1x324xi1>
    %c181_i32 = arith.constant 181 : i32
    %57 = vector.broadcast %c181_i32 : i32 to vector<1x324xi32>
    %58 = arith.cmpi sge, %0, %57 : vector<1x324xi32>
    %c197_i32 = arith.constant 197 : i32
    %59 = vector.broadcast %c197_i32 : i32 to vector<1x324xi32>
    %60 = arith.cmpi slt, %0, %59 : vector<1x324xi32>
    %61 = arith.andi %58, %60 : vector<1x324xi1>
    %62 = arith.ori %56, %61 : vector<1x324xi1>
    %c199_i32 = arith.constant 199 : i32
    %63 = vector.broadcast %c199_i32 : i32 to vector<1x324xi32>
    %64 = arith.cmpi sge, %0, %63 : vector<1x324xi32>
    %c215_i32 = arith.constant 215 : i32
    %65 = vector.broadcast %c215_i32 : i32 to vector<1x324xi32>
    %66 = arith.cmpi slt, %0, %65 : vector<1x324xi32>
    %67 = arith.andi %64, %66 : vector<1x324xi1>
    %68 = arith.ori %62, %67 : vector<1x324xi1>
    %c217_i32 = arith.constant 217 : i32
    %69 = vector.broadcast %c217_i32 : i32 to vector<1x324xi32>
    %70 = arith.cmpi sge, %0, %69 : vector<1x324xi32>
    %c233_i32 = arith.constant 233 : i32
    %71 = vector.broadcast %c233_i32 : i32 to vector<1x324xi32>
    %72 = arith.cmpi slt, %0, %71 : vector<1x324xi32>
    %73 = arith.andi %70, %72 : vector<1x324xi1>
    %74 = arith.ori %68, %73 : vector<1x324xi1>
    %c235_i32 = arith.constant 235 : i32
    %75 = vector.broadcast %c235_i32 : i32 to vector<1x324xi32>
    %76 = arith.cmpi sge, %0, %75 : vector<1x324xi32>
    %c251_i32 = arith.constant 251 : i32
    %77 = vector.broadcast %c251_i32 : i32 to vector<1x324xi32>
    %78 = arith.cmpi slt, %0, %77 : vector<1x324xi32>
    %79 = arith.andi %76, %78 : vector<1x324xi1>
    %80 = arith.ori %74, %79 : vector<1x324xi1>
    %c253_i32 = arith.constant 253 : i32
    %81 = vector.broadcast %c253_i32 : i32 to vector<1x324xi32>
    %82 = arith.cmpi sge, %0, %81 : vector<1x324xi32>
    %c269_i32 = arith.constant 269 : i32
    %83 = vector.broadcast %c269_i32 : i32 to vector<1x324xi32>
    %84 = arith.cmpi slt, %0, %83 : vector<1x324xi32>
    %85 = arith.andi %82, %84 : vector<1x324xi1>
    %86 = arith.ori %80, %85 : vector<1x324xi1>
    %c271_i32 = arith.constant 271 : i32
    %87 = vector.broadcast %c271_i32 : i32 to vector<1x324xi32>
    %88 = arith.cmpi sge, %0, %87 : vector<1x324xi32>
    %c287_i32 = arith.constant 287 : i32
    %89 = vector.broadcast %c287_i32 : i32 to vector<1x324xi32>
    %90 = arith.cmpi slt, %0, %89 : vector<1x324xi32>
    %91 = arith.andi %88, %90 : vector<1x324xi1>
    %92 = arith.ori %86, %91 : vector<1x324xi1>
    %c289_i32 = arith.constant 289 : i32
    %93 = vector.broadcast %c289_i32 : i32 to vector<1x324xi32>
    %94 = arith.cmpi sge, %0, %93 : vector<1x324xi32>
    %c305_i32 = arith.constant 305 : i32
    %95 = vector.broadcast %c305_i32 : i32 to vector<1x324xi32>
    %96 = arith.cmpi slt, %0, %95 : vector<1x324xi32>
    %97 = arith.andi %94, %96 : vector<1x324xi1>
    %98 = arith.ori %92, %97 : vector<1x324xi1>
    %cst = arith.constant 0.000000e+00 : f32
    %99 = vector.broadcast %cst : f32 to vector<8x362xf32>
    %c0 = arith.constant 0 : index
    %c0_0 = arith.constant 0 : index
    %100 = vector.load %arg9[%c0, %c0_0] : memref<8x362xf32, #tpu.memory_space<vmem>>, vector<8x362xf32>
    tpu.vector_store %arg9[%c0, %c0_0], %99 {strides = array<i32>} : memref<8x362xf32, #tpu.memory_space<vmem>>, vector<8x362xf32>,
    %cst_1 = arith.constant 0.000000e+00 : f32
    %101 = vector.broadcast %cst_1 : f32 to vector<8x362xf32>
    %c0_2 = arith.constant 0 : index
    %c0_3 = arith.constant 0 : index
    %102 = vector.load %arg10[%c0_2, %c0_3] : memref<8x362xf32, #tpu.memory_space<vmem>>, vector<8x362xf32>
    tpu.vector_store %arg10[%c0_2, %c0_3], %101 {strides = array<i32>} : memref<8x362xf32, #tpu.memory_space<vmem>>, vector<8x362xf32>,
    %c0_4 = arith.constant 0 : index
    %c0_5 = arith.constant 0 : index
    %c0_6 = arith.constant 0 : index
    %103 = vector.load %arg1[%c0_4, %c0_5, %c0_6] : memref<1x8x256xf32, #tpu.memory_space<vmem>>, vector<1x8x256xf32>
    %104 = vector.shape_cast %103 : vector<1x8x256xf32> to vector<8x256xf32>
    %105 = vector.extract_strided_slice %104 {offsets = [0, 0], sizes = [8, 16], strides = [1, 1]} : vector<8x256xf32> to vector<8x16xf32>
    %c0_7 = arith.constant 0 : index
    %c38 = arith.constant 38 : index
    %106 = vector.load %arg9[%c0_7, %c38] : memref<8x362xf32, #tpu.memory_space<vmem>>, vector<8x16xf32>
    tpu.vector_store %arg9[%c0_7, %c38], %105 {strides = array<i32>} : memref<8x362xf32, #tpu.memory_space<vmem>>, vector<8x16xf32>,
    %107 = vector.extract_strided_slice %104 {offsets = [0, 16], sizes = [8, 16], strides = [1, 1]} : vector<8x256xf32> to vector<8x16xf32>
    %c0_8 = arith.constant 0 : index
    %c56 = arith.constant 56 : index
    %108 = vector.load %arg9[%c0_8, %c56] : memref<8x362xf32, #tpu.memory_space<vmem>>, vector<8x16xf32>
    tpu.vector_store %arg9[%c0_8, %c56], %107 {strides = array<i32>} : memref<8x362xf32, #tpu.memory_space<vmem>>, vector<8x16xf32>,
    %109 = vector.extract_strided_slice %104 {offsets = [0, 32], sizes = [8, 16], strides = [1, 1]} : vector<8x256xf32> to vector<8x16xf32>
    %c0_9 = arith.constant 0 : index
    %c74 = arith.constant 74 : index
    %110 = vector.load %arg9[%c0_9, %c74] : memref<8x362xf32, #tpu.memory_space<vmem>>, vector<8x16xf32>
    tpu.vector_store %arg9[%c0_9, %c74], %109 {strides = array<i32>} : memref<8x362xf32, #tpu.memory_space<vmem>>, vector<8x16xf32>,
    %111 = vector.extract_strided_slice %104 {offsets = [0, 48], sizes = [8, 16], strides = [1, 1]} : vector<8x256xf32> to vector<8x16xf32>
    %c0_10 = arith.constant 0 : index
    %c92 = arith.constant 92 : index
    %112 = vector.load %arg9[%c0_10, %c92] : memref<8x362xf32, #tpu.memory_space<vmem>>, vector<8x16xf32>
    tpu.vector_store %arg9[%c0_10, %c92], %111 {strides = array<i32>} : memref<8x362xf32, #tpu.memory_space<vmem>>, vector<8x16xf32>,
    %113 = vector.extract_strided_slice %104 {offsets = [0, 64], sizes = [8, 16], strides = [1, 1]} : vector<8x256xf32> to vector<8x16xf32>
    %c0_11 = arith.constant 0 : index
    %c110 = arith.constant 110 : index
    %114 = vector.load %arg9[%c0_11, %c110] : memref<8x362xf32, #tpu.memory_space<vmem>>, vector<8x16xf32>
    tpu.vector_store %arg9[%c0_11, %c110], %113 {strides = array<i32>} : memref<8x362xf32, #tpu.memory_space<vmem>>, vector<8x16xf32>,
    %115 = vector.extract_strided_slice %104 {offsets = [0, 80], sizes = [8, 16], strides = [1, 1]} : vector<8x256xf32> to vector<8x16xf32>
    %c0_12 = arith.constant 0 : index
    %c128 = arith.constant 128 : index
    %116 = vector.load %arg9[%c0_12, %c128] : memref<8x362xf32, #tpu.memory_space<vmem>>, vector<8x16xf32>
    tpu.vector_store %arg9[%c0_12, %c128], %115 {strides = array<i32>} : memref<8x362xf32, #tpu.memory_space<vmem>>, vector<8x16xf32>,
    %117 = vector.extract_strided_slice %104 {offsets = [0, 96], sizes = [8, 16], strides = [1, 1]} : vector<8x256xf32> to vector<8x16xf32>
    %c0_13 = arith.constant 0 : index
    %c146 = arith.constant 146 : index
    %118 = vector.load %arg9[%c0_13, %c146] : memref<8x362xf32, #tpu.memory_space<vmem>>, vector<8x16xf32>
    tpu.vector_store %arg9[%c0_13, %c146], %117 {strides = array<i32>} : memref<8x362xf32, #tpu.memory_space<vmem>>, vector<8x16xf32>,
    %119 = vector.extract_strided_slice %104 {offsets = [0, 112], sizes = [8, 16], strides = [1, 1]} : vector<8x256xf32> to vector<8x16xf32>
    %c0_14 = arith.constant 0 : index
    %c164 = arith.constant 164 : index
    %120 = vector.load %arg9[%c0_14, %c164] : memref<8x362xf32, #tpu.memory_space<vmem>>, vector<8x16xf32>
    tpu.vector_store %arg9[%c0_14, %c164], %119 {strides = array<i32>} : memref<8x362xf32, #tpu.memory_space<vmem>>, vector<8x16xf32>,
    %121 = vector.extract_strided_slice %104 {offsets = [0, 128], sizes = [8, 16], strides = [1, 1]} : vector<8x256xf32> to vector<8x16xf32>
    %c0_15 = arith.constant 0 : index
    %c182 = arith.constant 182 : index
    %122 = vector.load %arg9[%c0_15, %c182] : memref<8x362xf32, #tpu.memory_space<vmem>>, vector<8x16xf32>
    tpu.vector_store %arg9[%c0_15, %c182], %121 {strides = array<i32>} : memref<8x362xf32, #tpu.memory_space<vmem>>, vector<8x16xf32>,
    %123 = vector.extract_strided_slice %104 {offsets = [0, 144], sizes = [8, 16], strides = [1, 1]} : vector<8x256xf32> to vector<8x16xf32>
    %c0_16 = arith.constant 0 : index
    %c200 = arith.constant 200 : index
    %124 = vector.load %arg9[%c0_16, %c200] : memref<8x362xf32, #tpu.memory_space<vmem>>, vector<8x16xf32>
    tpu.vector_store %arg9[%c0_16, %c200], %123 {strides = array<i32>} : memref<8x362xf32, #tpu.memory_space<vmem>>, vector<8x16xf32>,
    %125 = vector.extract_strided_slice %104 {offsets = [0, 160], sizes = [8, 16], strides = [1, 1]} : vector<8x256xf32> to vector<8x16xf32>
    %c0_17 = arith.constant 0 : index
    %c218 = arith.constant 218 : index
    %126 = vector.load %arg9[%c0_17, %c218] : memref<8x362xf32, #tpu.memory_space<vmem>>, vector<8x16xf32>
    tpu.vector_store %arg9[%c0_17, %c218], %125 {strides = array<i32>} : memref<8x362xf32, #tpu.memory_space<vmem>>, vector<8x16xf32>,
    %127 = vector.extract_strided_slice %104 {offsets = [0, 176], sizes = [8, 16], strides = [1, 1]} : vector<8x256xf32> to vector<8x16xf32>
    %c0_18 = arith.constant 0 : index
    %c236 = arith.constant 236 : index
    %128 = vector.load %arg9[%c0_18, %c236] : memref<8x362xf32, #tpu.memory_space<vmem>>, vector<8x16xf32>
    tpu.vector_store %arg9[%c0_18, %c236], %127 {strides = array<i32>} : memref<8x362xf32, #tpu.memory_space<vmem>>, vector<8x16xf32>,
    %129 = vector.extract_strided_slice %104 {offsets = [0, 192], sizes = [8, 16], strides = [1, 1]} : vector<8x256xf32> to vector<8x16xf32>
    %c0_19 = arith.constant 0 : index
    %c254 = arith.constant 254 : index
    %130 = vector.load %arg9[%c0_19, %c254] : memref<8x362xf32, #tpu.memory_space<vmem>>, vector<8x16xf32>
    tpu.vector_store %arg9[%c0_19, %c254], %129 {strides = array<i32>} : memref<8x362xf32, #tpu.memory_space<vmem>>, vector<8x16xf32>,
    %131 = vector.extract_strided_slice %104 {offsets = [0, 208], sizes = [8, 16], strides = [1, 1]} : vector<8x256xf32> to vector<8x16xf32>
    %c0_20 = arith.constant 0 : index
    %c272 = arith.constant 272 : index
    %132 = vector.load %arg9[%c0_20, %c272] : memref<8x362xf32, #tpu.memory_space<vmem>>, vector<8x16xf32>
    tpu.vector_store %arg9[%c0_20, %c272], %131 {strides = array<i32>} : memref<8x362xf32, #tpu.memory_space<vmem>>, vector<8x16xf32>,
    %133 = vector.extract_strided_slice %104 {offsets = [0, 224], sizes = [8, 16], strides = [1, 1]} : vector<8x256xf32> to vector<8x16xf32>
    %c0_21 = arith.constant 0 : index
    %c290 = arith.constant 290 : index
    %134 = vector.load %arg9[%c0_21, %c290] : memref<8x362xf32, #tpu.memory_space<vmem>>, vector<8x16xf32>
    tpu.vector_store %arg9[%c0_21, %c290], %133 {strides = array<i32>} : memref<8x362xf32, #tpu.memory_space<vmem>>, vector<8x16xf32>,
    %135 = vector.extract_strided_slice %104 {offsets = [0, 240], sizes = [8, 16], strides = [1, 1]} : vector<8x256xf32> to vector<8x16xf32>
    %c0_22 = arith.constant 0 : index
    %c308 = arith.constant 308 : index
    %136 = vector.load %arg9[%c0_22, %c308] : memref<8x362xf32, #tpu.memory_space<vmem>>, vector<8x16xf32>
    tpu.vector_store %arg9[%c0_22, %c308], %135 {strides = array<i32>} : memref<8x362xf32, #tpu.memory_space<vmem>>, vector<8x16xf32>,
    %c0_23 = arith.constant 0 : index
    %c0_24 = arith.constant 0 : index
    %c0_25 = arith.constant 0 : index
    %137 = vector.load %arg2[%c0_23, %c0_24, %c0_25] : memref<2x8x72xf32, #tpu.memory_space<vmem>>, vector<1x8x72xf32>
    %138 = vector.shape_cast %137 : vector<1x8x72xf32> to vector<8x72xf32>
    %c0_26 = arith.constant 0 : index
    %c0_27 = arith.constant 0 : index
    %c0_28 = arith.constant 0 : index
    %139 = vector.load %arg3[%c0_26, %c0_27, %c0_28] : memref<2x8x1xf32, #tpu.memory_space<vmem>>, vector<1x8x1xf32>
    %140 = vector.shape_cast %139 : vector<1x8x1xf32> to vector<8x1xf32>
    %c0_29 = arith.constant 0 : index
    %c0_30 = arith.constant 0 : index
    %141 = vector.load %arg9[%c0_29, %c0_30] : memref<8x362xf32, #tpu.memory_space<vmem>>, vector<8x324xf32>
    %c0_31 = arith.constant 0 : index
    %c1 = arith.constant 1 : index
    %142 = vector.load %arg9[%c0_31, %c1] : memref<8x362xf32, #tpu.memory_space<vmem>>, vector<8x324xf32>
    %c0_32 = arith.constant 0 : index
    %c2 = arith.constant 2 : index
    %143 = vector.load %arg9[%c0_32, %c2] : memref<8x362xf32, #tpu.memory_space<vmem>>, vector<8x324xf32>
    %c0_33 = arith.constant 0 : index
    %c18 = arith.constant 18 : index
    %144 = vector.load %arg9[%c0_33, %c18] : memref<8x362xf32, #tpu.memory_space<vmem>>, vector<8x324xf32>
    %c0_34 = arith.constant 0 : index
    %c19 = arith.constant 19 : index
    %145 = vector.load %arg9[%c0_34, %c19] : memref<8x362xf32, #tpu.memory_space<vmem>>, vector<8x324xf32>
    %c0_35 = arith.constant 0 : index
    %c20 = arith.constant 20 : index
    %146 = vector.load %arg9[%c0_35, %c20] : memref<8x362xf32, #tpu.memory_space<vmem>>, vector<8x324xf32>
    %c0_36 = arith.constant 0 : index
    %c36 = arith.constant 36 : index
    %147 = vector.load %arg9[%c0_36, %c36] : memref<8x362xf32, #tpu.memory_space<vmem>>, vector<8x324xf32>
    %c0_37 = arith.constant 0 : index
    %c37 = arith.constant 37 : index
    %148 = vector.load %arg9[%c0_37, %c37] : memref<8x362xf32, #tpu.memory_space<vmem>>, vector<8x324xf32>
    %c0_38 = arith.constant 0 : index
    %c38_39 = arith.constant 38 : index
    %149 = vector.load %arg9[%c0_38, %c38_39] : memref<8x362xf32, #tpu.memory_space<vmem>>, vector<8x324xf32>
    %150 = tpu.concatenate %141, %142, %143, %144, %145, %146, %147, %148, %149 in 0 : vector<8x324xf32>, vector<8x324xf32>, vector<8x324xf32>, vector<8x324xf32>, vector<8x324xf32>, vector<8x324xf32>, vector<8x324xf32>, vector<8x324xf32>, vector<8x324xf32> -> vector<72x324xf32>
    %cst_40 = arith.constant dense<0.000000e+00> : vector<8x324xf32>
    %151 = tpu.matmul %138, %150, %cst_40 {dimension_numbers = #tpu.dot_dimension_numbers<[1], [0], [0], [1], [0, 0, 1, 1], [], []>} : vector<8x72xf32>, vector<72x324xf32>, vector<8x324xf32> -> vector<8x324xf32>
    %152 = vector.broadcast %140 : vector<8x1xf32> to vector<8x324xf32>
    %153 = arith.addf %151, %152 : vector<8x324xf32>
    %cst_41 = arith.constant 0.000000e+00 : f32
    %154 = vector.broadcast %cst_41 : f32 to vector<8x324xf32>
    %155 = arith.maximumf %153, %154 : vector<8x324xf32>
    %cst_42 = arith.constant 0.000000e+00 : f32
    %156 = vector.shape_cast %98 : vector<1x324xi1> to vector<1x324xi1>
    %157 = vector.broadcast %156 : vector<1x324xi1> to vector<8x324xi1>
    %158 = vector.broadcast %cst_42 : f32 to vector<8x324xf32>
    %159 = arith.select %157, %155, %158 : vector<8x324xi1>, vector<8x324xf32>
    %c0_43 = arith.constant 0 : index
    %c19_44 = arith.constant 19 : index
    %160 = vector.load %arg10[%c0_43, %c19_44] : memref<8x362xf32, #tpu.memory_space<vmem>>, vector<8x324xf32>
    tpu.vector_store %arg10[%c0_43, %c19_44], %159 {strides = array<i32>} : memref<8x362xf32, #tpu.memory_space<vmem>>, vector<8x324xf32>,
    %c0_45 = arith.constant 0 : index
    %c0_46 = arith.constant 0 : index
    %c0_47 = arith.constant 0 : index
    %161 = vector.load %arg4[%c0_45, %c0_46, %c0_47] : memref<2x8x72xf32, #tpu.memory_space<vmem>>, vector<1x8x72xf32>
    %162 = vector.shape_cast %161 : vector<1x8x72xf32> to vector<8x72xf32>
    %c0_48 = arith.constant 0 : index
    %c0_49 = arith.constant 0 : index
    %c0_50 = arith.constant 0 : index
    %163 = vector.load %arg5[%c0_48, %c0_49, %c0_50] : memref<2x8x1xf32, #tpu.memory_space<vmem>>, vector<1x8x1xf32>
    %164 = vector.shape_cast %163 : vector<1x8x1xf32> to vector<8x1xf32>
    %c0_51 = arith.constant 0 : index
    %c0_52 = arith.constant 0 : index
    %165 = vector.load %arg10[%c0_51, %c0_52] : memref<8x362xf32, #tpu.memory_space<vmem>>, vector<8x324xf32>
    %c0_53 = arith.constant 0 : index
    %c1_54 = arith.constant 1 : index
    %166 = vector.load %arg10[%c0_53, %c1_54] : memref<8x362xf32, #tpu.memory_space<vmem>>, vector<8x324xf32>
    %c0_55 = arith.constant 0 : index
    %c2_56 = arith.constant 2 : index
    %167 = vector.load %arg10[%c0_55, %c2_56] : memref<8x362xf32, #tpu.memory_space<vmem>>, vector<8x324xf32>
    %c0_57 = arith.constant 0 : index
    %c18_58 = arith.constant 18 : index
    %168 = vector.load %arg10[%c0_57, %c18_58] : memref<8x362xf32, #tpu.memory_space<vmem>>, vector<8x324xf32>
    %c0_59 = arith.constant 0 : index
    %c19_60 = arith.constant 19 : index
    %169 = vector.load %arg10[%c0_59, %c19_60] : memref<8x362xf32, #tpu.memory_space<vmem>>, vector<8x324xf32>
    %c0_61 = arith.constant 0 : index
    %c20_62 = arith.constant 20 : index
    %170 = vector.load %arg10[%c0_61, %c20_62] : memref<8x362xf32, #tpu.memory_space<vmem>>, vector<8x324xf32>
    %c0_63 = arith.constant 0 : index
    %c36_64 = arith.constant 36 : index
    %171 = vector.load %arg10[%c0_63, %c36_64] : memref<8x362xf32, #tpu.memory_space<vmem>>, vector<8x324xf32>
    %c0_65 = arith.constant 0 : index
    %c37_66 = arith.constant 37 : index
    %172 = vector.load %arg10[%c0_65, %c37_66] : memref<8x362xf32, #tpu.memory_space<vmem>>, vector<8x324xf32>
    %c0_67 = arith.constant 0 : index
    %c38_68 = arith.constant 38 : index
    %173 = vector.load %arg10[%c0_67, %c38_68] : memref<8x362xf32, #tpu.memory_space<vmem>>, vector<8x324xf32>
    %174 = tpu.concatenate %165, %166, %167, %168, %169, %170, %171, %172, %173 in 0 : vector<8x324xf32>, vector<8x324xf32>, vector<8x324xf32>, vector<8x324xf32>, vector<8x324xf32>, vector<8x324xf32>, vector<8x324xf32>, vector<8x324xf32>, vector<8x324xf32> -> vector<72x324xf32>
    %cst_69 = arith.constant dense<0.000000e+00> : vector<8x324xf32>
    %175 = tpu.matmul %162, %174, %cst_69 {dimension_numbers = #tpu.dot_dimension_numbers<[1], [0], [0], [1], [0, 0, 1, 1], [], []>} : vector<8x72xf32>, vector<72x324xf32>, vector<8x324xf32> -> vector<8x324xf32>
    %176 = vector.broadcast %164 : vector<8x1xf32> to vector<8x324xf32>
    %177 = arith.addf %175, %176 : vector<8x324xf32>
    %cst_70 = arith.constant 1.000000e-01 : f32
    %178 = vector.broadcast %cst_70 : f32 to vector<8x324xf32>
    %179 = arith.mulf %177, %178 : vector<8x324xf32>
    %c0_71 = arith.constant 0 : index
    %c19_72 = arith.constant 19 : index
    %180 = vector.load %arg9[%c0_71, %c19_72] : memref<8x362xf32, #tpu.memory_space<vmem>>, vector<8x324xf32>
    %181 = arith.addf %179, %180 : vector<8x324xf32>
    %cst_73 = arith.constant 0.000000e+00 : f32
    %182 = vector.shape_cast %98 : vector<1x324xi1> to vector<1x324xi1>
    %183 = vector.broadcast %182 : vector<1x324xi1> to vector<8x324xi1>
    %184 = vector.broadcast %cst_73 : f32 to vector<8x324xf32>
    %185 = arith.select %183, %181, %184 : vector<8x324xi1>, vector<8x324xf32>
    %c0_74 = arith.constant 0 : index
    %c19_75 = arith.constant 19 : index
    %186 = vector.load %arg9[%c0_74, %c19_75] : memref<8x362xf32, #tpu.memory_space<vmem>>, vector<8x324xf32>
    tpu.vector_store %arg9[%c0_74, %c19_75], %185 {strides = array<i32>} : memref<8x362xf32, #tpu.memory_space<vmem>>, vector<8x324xf32>,
    %c1_76 = arith.constant 1 : index
    %c0_77 = arith.constant 0 : index
    %c0_78 = arith.constant 0 : index
    %187 = vector.load %arg2[%c1_76, %c0_77, %c0_78] : memref<2x8x72xf32, #tpu.memory_space<vmem>>, vector<1x8x72xf32>
    %188 = vector.shape_cast %187 : vector<1x8x72xf32> to vector<8x72xf32>
    %c1_79 = arith.constant 1 : index
    %c0_80 = arith.constant 0 : index
    %c0_81 = arith.constant 0 : index
    %189 = vector.load %arg3[%c1_79, %c0_80, %c0_81] : memref<2x8x1xf32, #tpu.memory_space<vmem>>, vector<1x8x1xf32>
    %190 = vector.shape_cast %189 : vector<1x8x1xf32> to vector<8x1xf32>
    %c0_82 = arith.constant 0 : index
    %c0_83 = arith.constant 0 : index
    %191 = vector.load %arg9[%c0_82, %c0_83] : memref<8x362xf32, #tpu.memory_space<vmem>>, vector<8x324xf32>
    %c0_84 = arith.constant 0 : index
    %c1_85 = arith.constant 1 : index
    %192 = vector.load %arg9[%c0_84, %c1_85] : memref<8x362xf32, #tpu.memory_space<vmem>>, vector<8x324xf32>
    %c0_86 = arith.constant 0 : index
    %c2_87 = arith.constant 2 : index
    %193 = vector.load %arg9[%c0_86, %c2_87] : memref<8x362xf32, #tpu.memory_space<vmem>>, vector<8x324xf32>
    %c0_88 = arith.constant 0 : index
    %c18_89 = arith.constant 18 : index
    %194 = vector.load %arg9[%c0_88, %c18_89] : memref<8x362xf32, #tpu.memory_space<vmem>>, vector<8x324xf32>
    %c0_90 = arith.constant 0 : index
    %c19_91 = arith.constant 19 : index
    %195 = vector.load %arg9[%c0_90, %c19_91] : memref<8x362xf32, #tpu.memory_space<vmem>>, vector<8x324xf32>
    %c0_92 = arith.constant 0 : index
    %c20_93 = arith.constant 20 : index
    %196 = vector.load %arg9[%c0_92, %c20_93] : memref<8x362xf32, #tpu.memory_space<vmem>>, vector<8x324xf32>
    %c0_94 = arith.constant 0 : index
    %c36_95 = arith.constant 36 : index
    %197 = vector.load %arg9[%c0_94, %c36_95] : memref<8x362xf32, #tpu.memory_space<vmem>>, vector<8x324xf32>
    %c0_96 = arith.constant 0 : index
    %c37_97 = arith.constant 37 : index
    %198 = vector.load %arg9[%c0_96, %c37_97] : memref<8x362xf32, #tpu.memory_space<vmem>>, vector<8x324xf32>
    %c0_98 = arith.constant 0 : index
    %c38_99 = arith.constant 38 : index
    %199 = vector.load %arg9[%c0_98, %c38_99] : memref<8x362xf32, #tpu.memory_space<vmem>>, vector<8x324xf32>
    %200 = tpu.concatenate %191, %192, %193, %194, %195, %196, %197, %198, %199 in 0 : vector<8x324xf32>, vector<8x324xf32>, vector<8x324xf32>, vector<8x324xf32>, vector<8x324xf32>, vector<8x324xf32>, vector<8x324xf32>, vector<8x324xf32>, vector<8x324xf32> -> vector<72x324xf32>
    %cst_100 = arith.constant dense<0.000000e+00> : vector<8x324xf32>
    %201 = tpu.matmul %188, %200, %cst_100 {dimension_numbers = #tpu.dot_dimension_numbers<[1], [0], [0], [1], [0, 0, 1, 1], [], []>} : vector<8x72xf32>, vector<72x324xf32>, vector<8x324xf32> -> vector<8x324xf32>
    %202 = vector.broadcast %190 : vector<8x1xf32> to vector<8x324xf32>
    %203 = arith.addf %201, %202 : vector<8x324xf32>
    %cst_101 = arith.constant 0.000000e+00 : f32
    %204 = vector.broadcast %cst_101 : f32 to vector<8x324xf32>
    %205 = arith.maximumf %203, %204 : vector<8x324xf32>
    %cst_102 = arith.constant 0.000000e+00 : f32
    %206 = vector.shape_cast %98 : vector<1x324xi1> to vector<1x324xi1>
    %207 = vector.broadcast %206 : vector<1x324xi1> to vector<8x324xi1>
    %208 = vector.broadcast %cst_102 : f32 to vector<8x324xf32>
    %209 = arith.select %207, %205, %208 : vector<8x324xi1>, vector<8x324xf32>
    %c0_103 = arith.constant 0 : index
    %c19_104 = arith.constant 19 : index
    %210 = vector.load %arg10[%c0_103, %c19_104] : memref<8x362xf32, #tpu.memory_space<vmem>>, vector<8x324xf32>
    tpu.vector_store %arg10[%c0_103, %c19_104], %209 {strides = array<i32>} : memref<8x362xf32, #tpu.memory_space<vmem>>, vector<8x324xf32>,
    %c1_105 = arith.constant 1 : index
    %c0_106 = arith.constant 0 : index
    %c0_107 = arith.constant 0 : index
    %211 = vector.load %arg4[%c1_105, %c0_106, %c0_107] : memref<2x8x72xf32, #tpu.memory_space<vmem>>, vector<1x8x72xf32>
    %212 = vector.shape_cast %211 : vector<1x8x72xf32> to vector<8x72xf32>
    %c1_108 = arith.constant 1 : index
    %c0_109 = arith.constant 0 : index
    %c0_110 = arith.constant 0 : index
    %213 = vector.load %arg5[%c1_108, %c0_109, %c0_110] : memref<2x8x1xf32, #tpu.memory_space<vmem>>, vector<1x8x1xf32>
    %214 = vector.shape_cast %213 : vector<1x8x1xf32> to vector<8x1xf32>
    %c0_111 = arith.constant 0 : index
    %c0_112 = arith.constant 0 : index
    %215 = vector.load %arg10[%c0_111, %c0_112] : memref<8x362xf32, #tpu.memory_space<vmem>>, vector<8x324xf32>
    %c0_113 = arith.constant 0 : index
    %c1_114 = arith.constant 1 : index
    %216 = vector.load %arg10[%c0_113, %c1_114] : memref<8x362xf32, #tpu.memory_space<vmem>>, vector<8x324xf32>
    %c0_115 = arith.constant 0 : index
    %c2_116 = arith.constant 2 : index
    %217 = vector.load %arg10[%c0_115, %c2_116] : memref<8x362xf32, #tpu.memory_space<vmem>>, vector<8x324xf32>
    %c0_117 = arith.constant 0 : index
    %c18_118 = arith.constant 18 : index
    %218 = vector.load %arg10[%c0_117, %c18_118] : memref<8x362xf32, #tpu.memory_space<vmem>>, vector<8x324xf32>
    %c0_119 = arith.constant 0 : index
    %c19_120 = arith.constant 19 : index
    %219 = vector.load %arg10[%c0_119, %c19_120] : memref<8x362xf32, #tpu.memory_space<vmem>>, vector<8x324xf32>
    %c0_121 = arith.constant 0 : index
    %c20_122 = arith.constant 20 : index
    %220 = vector.load %arg10[%c0_121, %c20_122] : memref<8x362xf32, #tpu.memory_space<vmem>>, vector<8x324xf32>
    %c0_123 = arith.constant 0 : index
    %c36_124 = arith.constant 36 : index
    %221 = vector.load %arg10[%c0_123, %c36_124] : memref<8x362xf32, #tpu.memory_space<vmem>>, vector<8x324xf32>
    %c0_125 = arith.constant 0 : index
    %c37_126 = arith.constant 37 : index
    %222 = vector.load %arg10[%c0_125, %c37_126] : memref<8x362xf32, #tpu.memory_space<vmem>>, vector<8x324xf32>
    %c0_127 = arith.constant 0 : index
    %c38_128 = arith.constant 38 : index
    %223 = vector.load %arg10[%c0_127, %c38_128] : memref<8x362xf32, #tpu.memory_space<vmem>>, vector<8x324xf32>
    %224 = tpu.concatenate %215, %216, %217, %218, %219, %220, %221, %222, %223 in 0 : vector<8x324xf32>, vector<8x324xf32>, vector<8x324xf32>, vector<8x324xf32>, vector<8x324xf32>, vector<8x324xf32>, vector<8x324xf32>, vector<8x324xf32>, vector<8x324xf32> -> vector<72x324xf32>
    %cst_129 = arith.constant dense<0.000000e+00> : vector<8x324xf32>
    %225 = tpu.matmul %212, %224, %cst_129 {dimension_numbers = #tpu.dot_dimension_numbers<[1], [0], [0], [1], [0, 0, 1, 1], [], []>} : vector<8x72xf32>, vector<72x324xf32>, vector<8x324xf32> -> vector<8x324xf32>
    %226 = vector.broadcast %214 : vector<8x1xf32> to vector<8x324xf32>
    %227 = arith.addf %225, %226 : vector<8x324xf32>
    %cst_130 = arith.constant 1.000000e-01 : f32
    %228 = vector.broadcast %cst_130 : f32 to vector<8x324xf32>
    %229 = arith.mulf %227, %228 : vector<8x324xf32>
    %c0_131 = arith.constant 0 : index
    %c19_132 = arith.constant 19 : index
    %230 = vector.load %arg9[%c0_131, %c19_132] : memref<8x362xf32, #tpu.memory_space<vmem>>, vector<8x324xf32>
    %231 = arith.addf %229, %230 : vector<8x324xf32>
    %cst_133 = arith.constant 0.000000e+00 : f32
    %232 = vector.shape_cast %98 : vector<1x324xi1> to vector<1x324xi1>
    %233 = vector.broadcast %232 : vector<1x324xi1> to vector<8x324xi1>
    %234 = vector.broadcast %cst_133 : f32 to vector<8x324xf32>
    %235 = arith.select %233, %231, %234 : vector<8x324xi1>, vector<8x324xf32>
    %c0_134 = arith.constant 0 : index
    %c19_135 = arith.constant 19 : index
    %236 = vector.load %arg9[%c0_134, %c19_135] : memref<8x362xf32, #tpu.memory_space<vmem>>, vector<8x324xf32>
    tpu.vector_store %arg9[%c0_134, %c19_135], %235 {strides = array<i32>} : memref<8x362xf32, #tpu.memory_space<vmem>>, vector<8x324xf32>,
    %c0_136 = arith.constant 0 : index
    %c0_137 = arith.constant 0 : index
    %237 = vector.load %arg6[%c0_136, %c0_137] : memref<8x72xf32, #tpu.memory_space<vmem>>, vector<8x72xf32>
    %c0_138 = arith.constant 0 : index
    %c0_139 = arith.constant 0 : index
    %238 = vector.load %arg7[%c0_138, %c0_139] : memref<8x1xf32, #tpu.memory_space<vmem>>, vector<8x1xf32>
    %c0_140 = arith.constant 0 : index
    %c0_141 = arith.constant 0 : index
    %239 = vector.load %arg9[%c0_140, %c0_141] : memref<8x362xf32, #tpu.memory_space<vmem>>, vector<8x324xf32>
    %c0_142 = arith.constant 0 : index
    %c1_143 = arith.constant 1 : index
    %240 = vector.load %arg9[%c0_142, %c1_143] : memref<8x362xf32, #tpu.memory_space<vmem>>, vector<8x324xf32>
    %c0_144 = arith.constant 0 : index
    %c2_145 = arith.constant 2 : index
    %241 = vector.load %arg9[%c0_144, %c2_145] : memref<8x362xf32, #tpu.memory_space<vmem>>, vector<8x324xf32>
    %c0_146 = arith.constant 0 : index
    %c18_147 = arith.constant 18 : index
    %242 = vector.load %arg9[%c0_146, %c18_147] : memref<8x362xf32, #tpu.memory_space<vmem>>, vector<8x324xf32>
    %c0_148 = arith.constant 0 : index
    %c19_149 = arith.constant 19 : index
    %243 = vector.load %arg9[%c0_148, %c19_149] : memref<8x362xf32, #tpu.memory_space<vmem>>, vector<8x324xf32>
    %c0_150 = arith.constant 0 : index
    %c20_151 = arith.constant 20 : index
    %244 = vector.load %arg9[%c0_150, %c20_151] : memref<8x362xf32, #tpu.memory_space<vmem>>, vector<8x324xf32>
    %c0_152 = arith.constant 0 : index
    %c36_153 = arith.constant 36 : index
    %245 = vector.load %arg9[%c0_152, %c36_153] : memref<8x362xf32, #tpu.memory_space<vmem>>, vector<8x324xf32>
    %c0_154 = arith.constant 0 : index
    %c37_155 = arith.constant 37 : index
    %246 = vector.load %arg9[%c0_154, %c37_155] : memref<8x362xf32, #tpu.memory_space<vmem>>, vector<8x324xf32>
    %c0_156 = arith.constant 0 : index
    %c38_157 = arith.constant 38 : index
    %247 = vector.load %arg9[%c0_156, %c38_157] : memref<8x362xf32, #tpu.memory_space<vmem>>, vector<8x324xf32>
    %248 = tpu.concatenate %239, %240, %241, %242, %243, %244, %245, %246, %247 in 0 : vector<8x324xf32>, vector<8x324xf32>, vector<8x324xf32>, vector<8x324xf32>, vector<8x324xf32>, vector<8x324xf32>, vector<8x324xf32>, vector<8x324xf32>, vector<8x324xf32> -> vector<72x324xf32>
    %cst_158 = arith.constant dense<0.000000e+00> : vector<8x324xf32>
    %249 = tpu.matmul %237, %248, %cst_158 {dimension_numbers = #tpu.dot_dimension_numbers<[1], [0], [0], [1], [0, 0, 1, 1], [], []>} : vector<8x72xf32>, vector<72x324xf32>, vector<8x324xf32> -> vector<8x324xf32>
    %250 = vector.broadcast %238 : vector<8x1xf32> to vector<8x324xf32>
    %251 = arith.addf %249, %250 : vector<8x324xf32>
    %252 = vector.extract_strided_slice %251 {offsets = [0, 19], sizes = [8, 16], strides = [1, 1]} : vector<8x324xf32> to vector<8x16xf32>
    %253 = vector.extract_strided_slice %251 {offsets = [0, 37], sizes = [8, 16], strides = [1, 1]} : vector<8x324xf32> to vector<8x16xf32>
    %254 = vector.extract_strided_slice %251 {offsets = [0, 55], sizes = [8, 16], strides = [1, 1]} : vector<8x324xf32> to vector<8x16xf32>
    %255 = vector.extract_strided_slice %251 {offsets = [0, 73], sizes = [8, 16], strides = [1, 1]} : vector<8x324xf32> to vector<8x16xf32>
    %256 = vector.extract_strided_slice %251 {offsets = [0, 91], sizes = [8, 16], strides = [1, 1]} : vector<8x324xf32> to vector<8x16xf32>
    %257 = vector.extract_strided_slice %251 {offsets = [0, 109], sizes = [8, 16], strides = [1, 1]} : vector<8x324xf32> to vector<8x16xf32>
    %258 = vector.extract_strided_slice %251 {offsets = [0, 127], sizes = [8, 16], strides = [1, 1]} : vector<8x324xf32> to vector<8x16xf32>
    %259 = vector.extract_strided_slice %251 {offsets = [0, 145], sizes = [8, 16], strides = [1, 1]} : vector<8x324xf32> to vector<8x16xf32>
    %260 = vector.extract_strided_slice %251 {offsets = [0, 163], sizes = [8, 16], strides = [1, 1]} : vector<8x324xf32> to vector<8x16xf32>
    %261 = vector.extract_strided_slice %251 {offsets = [0, 181], sizes = [8, 16], strides = [1, 1]} : vector<8x324xf32> to vector<8x16xf32>
    %262 = vector.extract_strided_slice %251 {offsets = [0, 199], sizes = [8, 16], strides = [1, 1]} : vector<8x324xf32> to vector<8x16xf32>
    %263 = vector.extract_strided_slice %251 {offsets = [0, 217], sizes = [8, 16], strides = [1, 1]} : vector<8x324xf32> to vector<8x16xf32>
    %264 = vector.extract_strided_slice %251 {offsets = [0, 235], sizes = [8, 16], strides = [1, 1]} : vector<8x324xf32> to vector<8x16xf32>
    %265 = vector.extract_strided_slice %251 {offsets = [0, 253], sizes = [8, 16], strides = [1, 1]} : vector<8x324xf32> to vector<8x16xf32>
    %266 = vector.extract_strided_slice %251 {offsets = [0, 271], sizes = [8, 16], strides = [1, 1]} : vector<8x324xf32> to vector<8x16xf32>
    %267 = vector.extract_strided_slice %251 {offsets = [0, 289], sizes = [8, 16], strides = [1, 1]} : vector<8x324xf32> to vector<8x16xf32>
    %268 = tpu.concatenate %252, %253, %254, %255, %256, %257, %258, %259, %260, %261, %262, %263, %264, %265, %266, %267 in 1 : vector<8x16xf32>, vector<8x16xf32>, vector<8x16xf32>, vector<8x16xf32>, vector<8x16xf32>, vector<8x16xf32>, vector<8x16xf32>, vector<8x16xf32>, vector<8x16xf32>, vector<8x16xf32>, vector<8x16xf32>, vector<8x16xf32>, vector<8x16xf32>, vector<8x16xf32>, vector<8x16xf32>, vector<8x16xf32> -> vector<8x256xf32>
    %cst_159 = arith.constant 1.000000e-01 : f32
    %269 = vector.broadcast %cst_159 : f32 to vector<8x256xf32>
    %270 = arith.mulf %268, %269 : vector<8x256xf32>
    %271 = arith.addf %270, %104 : vector<8x256xf32>
    %c0_160 = arith.constant 0 : index
    %c0_161 = arith.constant 0 : index
    %c0_162 = arith.constant 0 : index
    %272 = vector.load %arg8[%c0_160, %c0_161, %c0_162] : memref<1x8x256xf32, #tpu.memory_space<vmem>>, vector<1x8x256xf32>
    %273 = vector.shape_cast %272 : vector<1x8x256xf32> to vector<8x256xf32>
    %274 = vector.shape_cast %271 : vector<8x256xf32> to vector<1x8x256xf32>
    tpu.vector_store %arg8[%c0_160, %c0_161, %c0_162], %274 {strides = array<i32>} : memref<1x8x256xf32, #tpu.memory_space<vmem>>, vector<1x8x256xf32>,
    return
  }
  func.func @transform_0(%arg0: i32) -> (i32, i32, i32) {
    %c0_i32 = arith.constant 0 : i32
    %c0_i32_0 = arith.constant 0 : i32
    %c0_i32_1 = arith.constant 0 : i32
    return %arg0, %c0_i32, %c0_i32_0 : i32, i32, i32
  }
  func.func @transform_1(%arg0: i32) -> (i32, i32, i32) {
    %c0_i32 = arith.constant 0 : i32
    %c0_i32_0 = arith.constant 0 : i32
    %c0_i32_1 = arith.constant 0 : i32
    %c0_i32_2 = arith.constant 0 : i32
    return %c0_i32, %c0_i32_0, %c0_i32_1 : i32, i32, i32
  }
  func.func @transform_2(%arg0: i32) -> (i32, i32, i32) {
    %c0_i32 = arith.constant 0 : i32
    %c0_i32_0 = arith.constant 0 : i32
    %c0_i32_1 = arith.constant 0 : i32
    %c0_i32_2 = arith.constant 0 : i32
    return %c0_i32, %c0_i32_0, %c0_i32_1 : i32, i32, i32
  }
  func.func @transform_3(%arg0: i32) -> (i32, i32, i32) {
    %c0_i32 = arith.constant 0 : i32
    %c0_i32_0 = arith.constant 0 : i32
    %c0_i32_1 = arith.constant 0 : i32
    %c0_i32_2 = arith.constant 0 : i32
    return %c0_i32, %c0_i32_0, %c0_i32_1 : i32, i32, i32
  }
  func.func @transform_4(%arg0: i32) -> (i32, i32, i32) {
    %c0_i32 = arith.constant 0 : i32
    %c0_i32_0 = arith.constant 0 : i32
    %c0_i32_1 = arith.constant 0 : i32
    %c0_i32_2 = arith.constant 0 : i32
    return %c0_i32, %c0_i32_0, %c0_i32_1 : i32, i32, i32
  }
  func.func @transform_5(%arg0: i32) -> (i32, i32) {
    %c0_i32 = arith.constant 0 : i32
    %c0_i32_0 = arith.constant 0 : i32
    %c0_i32_1 = arith.constant 0 : i32
    return %c0_i32, %c0_i32_0 : i32, i32
  }
  func.func @transform_6(%arg0: i32) -> (i32, i32) {
    %c0_i32 = arith.constant 0 : i32
    %c0_i32_0 = arith.constant 0 : i32
    %c0_i32_1 = arith.constant 0 : i32
    return %c0_i32, %c0_i32_0 : i32, i32
  }
  func.func @transform_7(%arg0: i32) -> (i32, i32, i32) {
    %c0_i32 = arith.constant 0 : i32
    %c0_i32_0 = arith.constant 0 : i32
    %c0_i32_1 = arith.constant 0 : i32
    return %arg0, %c0_i32, %c0_i32_0 : i32, i32, i32
  }
}

</mosaic_0001>

<bundles_post_ra>
// kernel: tpu_custom_call.1
= control target key start
LH: loop header
LB: loop body
LE: loop exit
PB: predicated region body
PF: predicated region fallthrough
CT: control target
= control target key end

     0   :  { %12 = vsyncpa [#allocation5], 0  ;;  %s3470_s0 = inlined_call_operand.vmem [shape: f32[2,8,256], index: 0, kind: input, shape index: {}]   ;;  %s3471_s1 = inlined_call_operand.vmem [shape: f32[2,8,72], index: 1, kind: input, shape index: {}]   ;;  %s3472_s2 = inlined_call_operand.vmem [shape: f32[2,8,1], index: 2, kind: input, shape index: {}]   ;;  %s3473_s3 = inlined_call_operand.hbm [shape: f32[2,8,72], index: 3, kind: input, shape index: {}]   ;;  %s3474_s4 = inlined_call_operand.vmem [shape: f32[2,8,1], index: 4, kind: input, shape index: {}]   ;;  %s3475_s5 = inlined_call_operand.vmem [shape: f32[8,72], index: 5, kind: input, shape index: {}]   ;;  %s3476_s6 = inlined_call_operand.vmem [shape: f32[8,1], index: 6, kind: input, shape index: {}]   ;;  %s3477_s7 = inlined_call_operand.hbm [shape: f32[2,8,256], index: 7, kind: output, shape index: {}]  }
   0x1   :  { %13 = vsyncpa [#allocation6], 0 }
   0x2   :  { %15 = vsyncpa [#allocation6 + $0x1], 0  ;;  %s2915_s24 = smov 0   ;;  %s2917_s25 = smov 0  }
   0x3   :  { %s2919_s26 = smov 0   ;;  %s2921_s27 = smov 0  }
   0x4 LB: > { %s2936_s28 = sadd.s32 4294967295, %s2826_s27   ;;  %s2134_s29 = sadd.s32 4294967294, %s2826_s27   ;;  %s2826_s27 = sphi %s2921_s27, %s3595_s27   ;;  %s2822_s26 = sphi %s2919_s26, %s3594_s26   ;;  %s2818_s25 = sphi %s2917_s25, %s3593_s25   ;;  %s2814_s24 = sphi %s2915_s24, %s3592_s24  }
   0x5   : > { %s2940_s30 = sadd.s32 1, %s2826_s27   ;;  %s180_s8 = sadd.s32 1, %s2822_s26 }
   0x6   : > { %s177_s9 = ssub.s32 %s2826_s27, %s2940_s30  ;;  %p190_p0 = scmp.ne.s32.totalorder %s2822_s26, %s2818_s25 }
   0x7   : > { %p178_p1 = scmp.eq.s32.totalorder %s177_s9, 0  ;;  %p191_p2 = scmp.eq.s32.totalorder %s2936_s28, 1 }
   0x8   : > { %p196_p3 = scmp.ne.s32.totalorder %s2818_s25, %s2814_s24  ;;  %p197_p4 = scmp.eq.s32.totalorder %s2134_s29, 1 }
   0x9   : > { %s2951_s10 = scalar_select %p178_p1, %s2822_s26, %s180_s8  }
   0xa   : > { %p2953_p5 = por %p191_p2, %p190_p0  ;;  %p2957_p6 = por %p197_p4, %p196_p3 }
   0xb   : > { %p2135_p7 = scmp.ge.s32.totalorder %s2826_s27, 1  ;;  %p204_p8 = scmp.lt.s32.totalorder %s2826_s27, 3 }
   0xc   : > { %s3493_s11 = scalar_select %p2953_p5, 1, 0 }
   0xd   : > { %s3494_s12 = scalar_select %p2957_p6, 1, 0 }
   0xe   : > { %p3478_p9 = scmp.eq.s32.totalorder %s2936_s28, 0  ;;  %p2964_p10 = pnand %p2135_p7, %p204_p8 }
   0xf   : > { %s2828_s14 = smov [#allocation4]   ;;  %s2732_s19 = scalar_lea.hbm %s3473_s3, 256 }
  0x10   : > { %s3495_s13 = scalar_select %p2964_p10, 1, 0 }
  0x11   : > { %s222_s15 = sshll.u32 %s2828_s14, 4  ;;  %p2464_p11 = pneg %p2964_p10  ;;  %s223_s15 = int_to_ptr.vmem [resolvable:$true] %s222_s15 }
  0x12   : > { %p2733_p13 = scmp.ne.s32.totalorder %s3473_s3, %s2732_s19  ;;  %p2739_p3 = scmp.lt.u32.totalorder %s2732_s19, %s3473_s3 }
  0x13   : > { %p2972_p12 = pnand %p3478_p9, %p2464_p11 }
  0x15   : > { %p2734_p0 = pneg %p2972_p12 }
  0x17   : > { %p2735_p1 = pnand %p2734_p0, %p2733_p13 }
  0x19   : > { %p2736_p2 = pneg %p2735_p1 }
  0x1b   : > { %p2741_p4 = pnand %p2739_p3, %p2736_p2 }
  0x1d   : > { %2744 = shalt.err (!%p2741_p4)
}
  0x1e   : > { %s2745_s29 = scalar_lea.vmem %s223_s15, 256  ;;  %p2753_p9 = scmp.lt.s32.totalorder %s223_s15, %s223_s15 }
  0x1f   : > { %p2746_p7 = scmp.ne.s32.totalorder %s223_s15, %s2745_s29  ;;  %p2754_p6 = scmp.lt.s32.totalorder %s2745_s29, %s2745_s29 }
  0x21   : > { %p2748_p8 = pnand %p2746_p7, %p2734_p0  ;;  %p2755_p5 = por %p2754_p6, %p2753_p9 }
  0x23   : > { %p2749_p11 = pneg %p2748_p8 }
  0x25   : > { %p2756_p10 = pnand %p2755_p5, %p2749_p11 }
  0x27   : > { %2759 = shalt.err (!%p2756_p10)
}
  0x28   : > { %s2829_s8 = smov 128   ;;  %s2830_s9 = smov 8  }
  0x29   : > { %2467 = dma.hbm_to_vmem [thread:$0]  (!%p2972_p12), %s3473_s3, 256, %s223_s15, [#allocation5], %s2829_s8, %s2829_s8, %s2830_s9  }
  0x2a   : > { %p3497_p13 = scmp.ne.s32.totalorder %s3495_s13, 0 }
  0x2b   : > { %p3498_p1 = scmp.eq.s32.totalorder (!%p3497_p13), %s2936_s28, 0 }
  0x2c   : > { %255 = sbr.rel (%p3497_p13) target bundleno = 2704 (0xa90), region = 48 }
  0x33   : > { %2805 = dma.done.wait (%p3498_p1), [#allocation5], 256   ;;  %p3499_p0 = pmov %p3498_p1 }
  0x34   : > { %p287_p5 = scmp.lt.s32.totalorder %s2936_s28, 1  ;;  %v2831_v0 = vmov 0.0   ;;  %vm493_vm0 = vcmask 867328   ;;  %s2832_s20 = smov 52   ;;  %vm3481_vm1 = vcmask 130048   ;;  %vm534_vm2 = vcmask 277648  }
  0x35   : > { %2807 = vsyncadd (%p3499_p0), [#allocation5], 4294967040  ;;  %492 = vst [vmem:[#allocation2 + $0x8] sm:$0xff] %v2831_v0  ;;  %761 = vmatprep.mubr.f32.mxu0 %v2831_v0  ;;  %s2833_s21 = smov 48   ;;  %s2834_s22 = smov 54   ;;  %vm539_vm3 = vcmask 425248  }
  0x36   : > { %491 = vst [vmem:[#allocation2] sm:$0xff] %v2831_v0  ;;  %495 = vst [vmem:[#allocation3] sm:$0xff] %v2831_v0  ;;  %s288_s13 = scalar_select %p287_p5, %s2936_s28, 1  ;;  %vm545_vm4 = vcmask 572848   ;;  %vm550_vm5 = vcmask 720448   ;;  %vm504_vm6 = vcmask 441648  }
  0x37   : > { %494 = vst.msk [vmem:[#allocation2 + $0x10] sm:$0xff] %vm493_vm0, %v2831_v0  ;;  %497 = vst.msk [vmem:[#allocation3 + $0x10] sm:$0xff] %vm493_vm0, %v2831_v0  ;;  %s2835_s23 = smov 50   ;;  %s2836_s29 = smov 56   ;;  %vm509_vm7 = vcmask 589248   ;;  %vm567_vm8 = vcmask 113664  }
  0x38   : > { %s2161_s15 = sshll.u32 %s288_s13, 4  ;;  %s2837_s8 = smov 38   ;;  %vm572_vm9 = vcmask 261248   ;;  %vm555_vm10 = vcmask 868048   ;;  %vm560_vm11 = vcmask 1015648   ;;  %vm514_vm12 = vcmask 736848  }
  0x39   : > { %s3007_s19 = scalar_lea.vmem %s3470_s0, %s2161_s15  ;;  %s2838_s9 = smov 40   ;;  %vm565_vm13 = vcmask 1048560   ;;  %vm519_vm14 = vcmask 884448   ;;  %vm577_vm15 = vcmask 408848   ;;  %vm524_vm0 = vcmask 1032048   ;;  %v585_v25 = vld [vmem:[%s3472_s2] sm:$0xff] }
  0x3a   : > { %v498_v1 = vld [vmem:[%s3007_s19] sm:$0xff]  ;;  %v499_v2 = vld [vmem:[%s3007_s19 + $0x8] sm:$0xff]  ;;  %s2839_s14 = smov 62   ;;  %s2840_s17 = smov 64   ;;  %v2850_v20 = vmov 0.0|0.0   ;;  %v2857_v24 = vmov 0  }
  0x3b   : > { %536 = vrot.lane.b32.xlu1 %v498_v1, %s2832_s20  ;;  %526 = vrot.lane.b32.xlu0 %v498_v1, %s2833_s21  ;;  %s2841_s13 = smov 58   ;;  %s2842_s15 = smov 60  }
  0x3c   : > { %s2843_s16 = smov 42   ;;  %s2844_s18 = smov 44   ;;  %2334 = vmatprep.subr.bf16.mxu1 %v2850_v20  ;;  %2588 = vset.pattern.permute.xlu1 %v2857_v24 }
  0x3d   : > { %s2845_s20 = smov 66   ;;  %s2846_s21 = smov 46   ;;  %2624 = vset.pattern.permute.xlu0 %v2857_v24 }
  0x3e   : > { %p3590_p9 = scmp.ne.s32.totalorder %s3493_s11, 0 }
  0x3f   : > { %542 = vrot.lane.b32.xlu1 %v499_v2, %s2834_s22  ;;  %531 = vrot.lane.b32.xlu0 %v498_v1, %s2835_s23  ;;  %s2847_s22 = smov 68   ;;  %s2848_s23 = smov 126  }
  0x43   : > { %547 = vrot.lane.b32.xlu1 %v499_v2, %s2836_s29  ;;  %501 = vrot.lane.b32.xlu0 %v498_v1, %s2837_s8  ;;  %s2849_s29 = smov 127   ;;  %s2851_s8 = smov 109  }
  0x47   : > { %506 = vrot.lane.b32.xlu1 %v498_v1, %s2838_s9  ;;  %562 = vrot.lane.b32.xlu0 %v499_v2, %s2839_s14  ;;  %s2852_s9 = smov 110   ;;  %s2853_s14 = smov 92  }
  0x4b   : > { %569 = vrot.lane.b32.xlu1 %v499_v2, %s2840_s17  ;;  %552 = vrot.lane.b32.xlu0 %v499_v2, %s2841_s13  ;;  %s2854_s17 = smov 108   ;;  %s2855_s13 = smov 91  }
  0x4f   : > { %557 = vrot.lane.b32.xlu1 %v499_v2, %s2842_s15  ;;  %511 = vrot.lane.b32.xlu0 %v498_v1, %s2843_s16  ;;  %s2858_s15 = smov 90   ;;  %s2863_s16 = smov 107  }
  0x53   : > { %516 = vrot.lane.b32.xlu1 %v498_v1, %s2844_s18  ;;  %574 = vrot.lane.b32.xlu0 %v499_v2, %s2845_s20  ;;  %s2864_s18 = smov 103   ;;  %s2865_s20 = smov 97  }
  0x57   : > { %521 = vrot.lane.b32.xlu1 %v498_v1, %s2846_s21  ;;  %579 = vrot.lane.b32.xlu0 %v499_v2, %s2847_s22  ;;  %s2859_s22 = smov 19   ;;  %s2866_s21 = smov 101  }
  0xad   : > { %v537_v3 = vpop.permute.xlu1 %536  ;;  %v527_v4 = vpop.permute.xlu0 %526 }
  0xae   : > { %530 = vst.msk [vmem:[#allocation2 + $0x8] sm:$0xff] %vm3481_vm1, %v527_v4 }
  0xb1   : > { %v543_v5 = vpop.permute.xlu1 %542  ;;  %v532_v6 = vpop.permute.xlu0 %531 }
  0xb2   : > { %535 = vst.msk [vmem:[#allocation2 + $0x8] sm:$0xff] %vm534_vm2, %v532_v6  ;;  %vm582_vm2 = vcmask 556448  }
  0xb3   : > { %540 = vst.msk [vmem:[#allocation2 + $0x8] sm:$0xff] %vm539_vm3, %v537_v3  ;;  %vm3485_vm3 = vmmov 0  }
  0xb4   : > { %546 = vst.msk [vmem:[#allocation2 + $0x8] sm:$0xff] %vm545_vm4, %v543_v5  ;;  %2231 = vmatprep.mubr.msk.f32.mxu1 %vm3485_vm3, %v2831_v0  ;;  %vm3492_vm4 = vcmask 1039360  }
  0xb5   : > { %v548_v7 = vpop.permute.xlu1 %547  ;;  %v502_v8 = vpop.permute.xlu0 %501 }
  0xb6   : > { %551 = vst.msk [vmem:[#allocation2 + $0x8] sm:$0xff] %vm550_vm5, %v548_v7  ;;  %vm3491_vm5 = vcmask 900096  }
  0xb7   : > { %505 = vst.msk [vmem:[#allocation2] sm:$0xff] %vm504_vm6, %v502_v8  ;;  %vm3490_vm6 = vcmask 1031168  }
  0xb9   : > { %v507_v9 = vpop.permute.xlu1 %506  ;;  %v563_v10 = vpop.permute.xlu0 %562 }
  0xba   : > { %510 = vst.msk [vmem:[#allocation2] sm:$0xff] %vm509_vm7, %v507_v9  ;;  %vm3489_vm7 = vcmask 883712  }
  0xbb   : > { %568 = vst.msk [vmem:[#allocation2 + $0x10] sm:$0xff] %vm567_vm8, %v563_v10  ;;  %vm3487_vm8 = vcmask 891904  }
  0xbd   : > { %v570_v11 = vpop.permute.xlu1 %569  ;;  %v553_v12 = vpop.permute.xlu0 %552 }
  0xbe   : > { %573 = vst.msk [vmem:[#allocation2 + $0x10] sm:$0xff] %vm572_vm9, %v570_v11  ;;  %vm3484_vm9 = vcmask 744448  }
  0xbf   : > { %556 = vst.msk [vmem:[#allocation2 + $0x8] sm:$0xff] %vm555_vm10, %v553_v12  ;;  %vm3483_vm10 = vcmask 752640  }
  0xc1   : > { %v558_v13 = vpop.permute.xlu1 %557  ;;  %v512_v14 = vpop.permute.xlu0 %511 }
  0xc2   : > { %561 = vst.msk [vmem:[#allocation2 + $0x8] sm:$0xff] %vm560_vm11, %v558_v13  ;;  %vm3482_vm11 = vcmask 736256  }
  0xc3   : > { %515 = vst.msk [vmem:[#allocation2] sm:$0xff] %vm514_vm12, %v512_v14  ;;  %vm3488_vm12 = vcmask 588800  }
  0xc4   : > { %566 = vst.msk [vmem:[#allocation2 + $0x8] sm:$0xff] %vm565_vm13, %v563_v10 }
  0xc5   : > { %v517_v15 = vpop.permute.xlu1 %516  ;;  %v575_v16 = vpop.permute.xlu0 %574 }
  0xc6   : > { %520 = vst.msk [vmem:[#allocation2] sm:$0xff] %vm519_vm14, %v517_v15 }
  0xc7   : > { %578 = vst.msk [vmem:[#allocation2 + $0x10] sm:$0xff] %vm577_vm15, %v575_v16 }
  0xc9   : > { %v522_v17 = vpop.permute.xlu1 %521  ;;  %v580_v18 = vpop.permute.xlu0 %579 }
  0xca   : > { %525 = vst.msk [vmem:[#allocation2] sm:$0xff] %vm524_vm0, %v522_v17 }
  0xcb   : > { %583 = vst.msk [vmem:[#allocation2 + $0x10] sm:$0xff] %vm582_vm2, %v580_v18  ;;  %v3031_v22 = vld [vmem:[#allocation2 + $0x8] sm:$0xff] }
  0xd1   : > { %v3014_v19 = vld [vmem:[#allocation2] sm:$0xff] }
  0xd2   : > { %604 = vrot.lane.b32.xlu0 %v3014_v19, %s2848_s23  ;;  %592 = vrot.lane.b32.xlu1 %v3014_v19, %s2849_s29  ;;  %v3025_v21 = vld [vmem:[#allocation2 + $0x10] sm:$0xff] }
  0xd3   : > { %v2553_v23 = vpack.i.bf16 %v3025_v21, %v3031_v22 }
  0xd6   : > { %628 = vrot.lane.b32.xlu0 %v3014_v19, %s2851_s8  ;;  %616 = vrot.lane.b32.xlu1 %v3014_v19, %s2852_s9 }
  0xda   : > { %652 = vrot.lane.b32.xlu0 %v3014_v19, %s2853_s14  ;;  %640 = vrot.lane.b32.xlu1 %v3014_v19, %s2854_s17 }
  0xde   : > { %2554 = vrot.lane.b32.xlu0 %v2553_v23, %s2849_s29  ;;  %2564 = vrot.lane.b32.xlu1 %v2553_v23, %s2852_s9 }
  0xe2   : > { %2559 = vrot.lane.b32.xlu0 %v2553_v23, %s2848_s23  ;;  %2574 = vrot.lane.b32.xlu1 %v2553_v23, %s2854_s17 }
  0xe6   : > { %2569 = vrot.lane.b32.xlu0 %v2553_v23, %s2851_s8  ;;  %2584 = vrot.lane.b32.xlu1 %v2553_v23, %s2855_s13 }
  0xea   : > { %2579 = vrot.lane.b32.xlu0 %v2553_v23, %s2853_s14  ;;  %664 = vrot.lane.b32.xlu1 %v3014_v19, %s2855_s13 }
  0xee   : > { %678 = vrot.lane.b32.xlu0 %v3031_v22, %s2858_s15  ;;  %680 = vrot.lane.b32.xlu1 %v3025_v21, %s2858_s15 }
  0xf2   : > { %676 = vrot.lane.b32.xlu0 %v3014_v19, %s2858_s15  ;;  %690 = vperm.xlu1 %2588, %v585_v25   ;;  %v584_v25 = vld [vmem:[%s3471_s1] sm:$0xff] }
 0x144   : > { %v605_v26 = vpop.permute.xlu0 %604  ;;  %v593_v27 = vpop.permute.xlu1 %592 }
 0x148   : > { %v629_v28 = vpop.permute.xlu0 %628  ;;  %v617_v29 = vpop.permute.xlu1 %616 }
 0x14c   : > { %v3057_v30 = vpop.permute.xlu0 %652  ;;  %v641_v31 = vpop.permute.xlu1 %640 }
 0x150   : > { %v2555_v32 = vpop.permute.xlu0 %2554  ;;  %v2565_v33 = vpop.permute.xlu1 %2564 }
 0x151   : > { %v2556_v34 = vunpack.i.l.bf16 %v2555_v32  ;;  %v2557_v35 = vunpack.i.h.bf16 %v2555_v32  ;;  %v2567_v36 = vunpack.i.h.bf16 %v2565_v33  ;;  %v2566_v37 = vunpack.i.l.bf16 %v2565_v33 }
 0x153   : > { %v2335_v38 = vpack.c.bf16 %v2557_v35, %v3025_v21  ;;  %v600_v39 = vsel %vm3492_vm4, %v2556_v34, %v2557_v35  ;;  %v599_v40 = vsel %vm3492_vm4, %v593_v27, %v2556_v34  ;;  %v624_v49 = vsel %vm3491_vm5, %v2566_v37, %v2567_v36 }
 0x154   : > { %v2560_v41 = vpop.permute.xlu0 %2559  ;;  %v2575_v42 = vpop.permute.xlu1 %2574  ;;  %v2318_v43 = vpack.c.bf16 %v600_v39, %v3031_v22  ;;  %v2320_v44 = vpack.c.bf16 %v599_v40, %v3014_v19  ;;  %v623_v53 = vsel %vm3491_vm5, %v617_v29, %v2566_v37 }
 0x155   : > { %v2562_v45 = vunpack.i.h.bf16 %v2560_v41  ;;  %v2561_v46 = vunpack.i.l.bf16 %v2560_v41  ;;  %2336 = vmatpush3.bf16.msra.mxu1 %v2335_v38  ;;  %v2577_v47 = vunpack.i.h.bf16 %v2575_v42  ;;  %v2576_v48 = vunpack.i.l.bf16 %v2575_v42 }
 0x156   : > { %2319 = vmatprep.subr.bf16.mxu0 %v2318_v43  ;;  %2337 = vmatprep.subr.bf16.mxu1 %v2850_v20 }
 0x157   : > { %2321 = vmatpush1.bf16.msra.mxu0 %v2320_v44  ;;  %v2338_v50 = vpack.c.bf16 %v2567_v36, %v2562_v45  ;;  %v612_v51 = vsel %vm3490_vm6, %v2561_v46, %v2562_v45  ;;  %v611_v52 = vsel %vm3490_vm6, %v605_v26, %v2561_v46  ;;  %v648_v62 = vsel %vm3489_vm7, %v2576_v48, %v2577_v47 }
 0x158   : > { %v2570_v54 = vpop.permute.xlu0 %2569  ;;  %v2585_v55 = vpop.permute.xlu1 %2584  ;;  %v2322_v56 = vpack.c.bf16 %v624_v49, %v612_v51  ;;  %v2324_v57 = vpack.c.bf16 %v623_v53, %v611_v52  ;;  %v647_v3 = vsel %vm3489_vm7, %v641_v31, %v2576_v48 }
 0x159   : > { %v2572_v58 = vunpack.i.h.bf16 %v2570_v54  ;;  %v2571_v59 = vunpack.i.l.bf16 %v2570_v54  ;;  %2339 = vmatpush3.bf16.msra.mxu1 %v2338_v50  ;;  %v2587_v60 = vunpack.i.h.bf16 %v2585_v55  ;;  %v2586_v61 = vunpack.i.l.bf16 %v2585_v55 }
 0x15a   : > { %2323 = vmatprep.subr.bf16.mxu0 %v2322_v56  ;;  %2340 = vmatprep.subr.bf16.mxu1 %v2850_v20 }
 0x15b   : > { %2325 = vmatpush1.bf16.msra.mxu0 %v2324_v57  ;;  %v2341_v63 = vpack.c.bf16 %v2577_v47, %v2572_v58  ;;  %v636_v1 = vsel %vm3487_vm8, %v2571_v59, %v2572_v58  ;;  %v635_v2 = vsel %vm3487_vm8, %v629_v28, %v2571_v59  ;;  %v672_v10 = vsel %vm3484_vm9, %v2586_v61, %v2587_v60 }
 0x15c   : > { %v2580_v4 = vpop.permute.xlu0 %2579  ;;  %v665_v5 = vpop.permute.xlu1 %664  ;;  %v2326_v6 = vpack.c.bf16 %v648_v62, %v636_v1  ;;  %v2328_v7 = vpack.c.bf16 %v647_v3, %v635_v2  ;;  %v292_v28 = vlaneseq }
 0x15d   : > { %v2582_v8 = vunpack.i.h.bf16 %v2580_v4  ;;  %v2581_v9 = vunpack.i.l.bf16 %v2580_v4  ;;  %2342 = vmatpush3.bf16.msra.mxu1 %v2341_v63  ;;  %v671_v12 = vsel %vm3484_vm9, %v665_v5, %v2586_v61  ;;  %v871_v61 = vld [vmem:[%s3474_s4] sm:$0xff] }
 0x15e   : > { %2327 = vmatprep.subr.bf16.mxu0 %v2326_v6  ;;  %2343 = vmatprep.subr.bf16.mxu1 %v2850_v20  ;;  %v293_v29 = vand.u32 127, %v292_v28 }
 0x15f   : > { %v659_v11 = vsel %vm3483_vm10, %v3057_v30, %v2581_v9  ;;  %2329 = vmatpush1.bf16.msra.mxu0 %v2328_v7  ;;  %v2344_v13 = vpack.c.bf16 %v2587_v60, %v2582_v8  ;;  %v660_v14 = vsel %vm3483_vm10, %v2581_v9, %v2582_v8 }
 0x160   : > { %v2332_v15 = vpack.c.bf16 %v671_v12, %v659_v11  ;;  %v679_v16 = vpop.permute.xlu0 %678  ;;  %v681_v17 = vpop.permute.xlu1 %680  ;;  %v2330_v18 = vpack.c.bf16 %v672_v10, %v660_v14  ;;  %v294_v30 = vadd.s32 128, %v293_v29  ;;  %vm299_vm15 = vcmp.ge.s32.totalorder %v293_v29, 19 }
 0x161   : > { %2345 = vmatpush3.bf16.msra.mxu1 %v2344_v13  ;;  %v684_v23 = vsel %vm3482_vm11, %v679_v16, %v681_v17  ;;  %vm302_vm0 = vcmp.lt.s32.totalorder %v293_v29, 35  ;;  %vm311_vm2 = vcmp.ge.s32.totalorder %v293_v29, 37  ;;  %vm314_vm1 = vcmp.lt.s32.totalorder %v293_v29, 53 }
 0x162   : > { %2331 = vmatprep.subr.bf16.mxu0 %v2330_v18  ;;  %2229 = vmatprep.subr.mxu1 %v2831_v0  ;;  %vm384_vm13 = vcmp.ge.s32.totalorder %v294_v30, 145  ;;  %vm387_vm14 = vcmp.lt.s32.totalorder %v294_v30, 161  ;;  %vm3092_vm9 = vmand %vm299_vm15, %vm302_vm0  ;;  %vm399_vm8 = vcmp.lt.s32.totalorder %v294_v30, 179  ;;  %vm323_vm7 = vcmp.ge.s32.totalorder %v293_v29, 55 }
 0x163   : > { %2333 = vmatpush1.bf16.msra.mxu0 %v2332_v15  ;;  %vm390_vm10 = vmand %vm384_vm13, %vm387_vm14  ;;  %vm326_vm6 = vcmp.lt.s32.totalorder %v293_v29, 71  ;;  %vm408_vm14 = vcmp.ge.s32.totalorder %v294_v30, 181  ;;  %vm411_vm15 = vcmp.lt.s32.totalorder %v294_v30, 197  ;;  %v295_v36 = vadd.s32 256, %v293_v29 }
 0x164   : > { %v677_v26 = vpop.permute.xlu0 %676  ;;  %713 = vmatprep.subr.mxu0 %v684_v23  ;;  %vm329_vm0 = vmand %vm323_vm7, %vm326_vm6  ;;  %vm347_vm6 = vcmp.ge.s32.totalorder %v293_v29, 91  ;;  %vm350_vm7 = vcmp.lt.s32.totalorder %v293_v29, 107 }
 0x165   : > { %2230 = vmatpush3.msra.mxu1 %v681_v17  ;;  %v683_v27 = vsel %vm3482_vm11, %v677_v26, %v679_v16  ;;  %vm375_vm11 = vcmp.lt.s32.totalorder %v294_v30, 143 }
 0x166   : > { %2232 = vmatmul.mubr.msk.f32.vlgmr.msra.gmra.mrb[0].mxu1 %vm3488_vm12, %v584_v25  ;;  %2362 = vmatprep.subr.bf16.mxu1 %v2850_v20  ;;  %vm3096_vm5 = vmor %vm375_vm11, %vm390_vm10 }
 0x167   : > { %714 = vmatpush1.msra.mxu0 %v683_v27  ;;  %2252 = vmatprep.mubr.msk.f32.mxu1 %vm3485_vm3, %v2831_v0  ;;  %vm396_vm3 = vcmp.ge.s32.totalorder %v294_v30, 163  ;;  %vm414_vm11 = vmand %vm408_vm14, %vm411_vm15  ;;  %vm432_vm15 = vcmp.ge.s32.totalorder %v294_v30, 217 }
 0x168   : > { %2143 = vmatmul.mubr.msk.f32.vlgmr.msra.gmra.mrb[0].mxu0 %vm3488_vm12, %v584_v25  ;;  %vm317_vm12 = vmand %vm311_vm2, %vm314_vm1  ;;  %vm335_vm1 = vcmp.ge.s32.totalorder %v293_v29, 73  ;;  %vm338_vm2 = vcmp.lt.s32.totalorder %v293_v29, 89 }
 0x169   : > { %1038 = vmatprep.mubr.f32.mxu0 %v2831_v0  ;;  %vm3100_vm4 = vmand %vm396_vm3, %vm399_vm8  ;;  %vm420_vm8 = vcmp.ge.s32.totalorder %v294_v30, 199 }
 0x16a   : > { %vm320_vm13 = vmor %vm3092_vm9, %vm317_vm12  ;;  %vm423_vm9 = vcmp.lt.s32.totalorder %v294_v30, 215 }
 0x16b   : > { %vm405_vm10 = vmor %vm3096_vm5, %vm3100_vm4 }
 0x16c   : > { %vm3110_vm3 = vmor %vm320_vm13, %vm329_vm0  ;;  %vm435_vm0 = vcmp.lt.s32.totalorder %v294_v30, 233 }
 0x16d   : > { %vm341_vm12 = vmand %vm335_vm1, %vm338_vm2  ;;  %vm359_vm1 = vcmp.ge.s32.totalorder %v293_v29, 109  ;;  %vm362_vm2 = vcmp.lt.s32.totalorder %v293_v29, 125 }
 0x16e   : > { %vm3114_vm4 = vmor %vm405_vm10, %vm414_vm11 }
 0x16f   : > { %vm426_vm5 = vmand %vm420_vm8, %vm423_vm9  ;;  %vm444_vm9 = vcmp.ge.s32.totalorder %v294_v30, 235 }
 0x170   : > { %vm344_vm14 = vmor %vm3110_vm3, %vm341_vm12  ;;  %vm447_vm3 = vcmp.lt.s32.totalorder %v294_v30, 251 }
 0x171   : > { %vm353_vm13 = vmand %vm347_vm6, %vm350_vm7  ;;  %v691_v37 = vpop.permute.xlu1 %690 }
 0x172   : > { %vm429_vm10 = vmor %vm3114_vm4, %vm426_vm5  ;;  %vm371_vm5 = vcmp.ge.s32.totalorder %v293_v29, 127 }
 0x173   : > { %vm438_vm11 = vmand %vm432_vm15, %vm435_vm0  ;;  %vm456_vm15 = vcmp.ge.s32.totalorder %v294_v30, 253 }
 0x174   : > { %vm356_vm8 = vmor %vm344_vm14, %vm353_vm13  ;;  %vm469_vm14 = vcmp.ge.s32.totalorder %v295_v36, 271 }
 0x175   : > { %vm365_vm12 = vmand %vm359_vm1, %vm362_vm2  ;;  %vm472_vm1 = vcmp.lt.s32.totalorder %v295_v36, 287 }
 0x176   : > { %vm441_vm6 = vmor %vm429_vm10, %vm438_vm11  ;;  %vm460_vm10 = vcmp.lt.s32.totalorder %v295_v36, 269 }
 0x177   : > { %vm450_vm7 = vmand %vm444_vm9, %vm447_vm3  ;;  %vm484_vm9 = vcmp.lt.s32.totalorder %v295_v36, 305 }
 0x178   : > { %vm368_vm4 = vmor %vm356_vm8, %vm365_vm12  ;;  %vm481_vm8 = vcmp.ge.s32.totalorder %v295_v36, 289 }
 0x179   : > { %vm453_vm0 = vmor %vm441_vm6, %vm450_vm7 }
 0x17a   : > { %vm380_vm13 = vmor %vm368_vm4, %vm371_vm5  ;;  %vm865_vm5 = vcmask 1047704  }
 0x17b   : > { %vm465_vm2 = vmor %vm453_vm0, %vm456_vm15  ;;  %v3123_v39 = vsel %vm380_vm13, 1, %v2857_v24  ;;  %vm868_vm0 = vcmask 711680   ;;  %vm859_vm15 = vcmask 154624   ;;  %vm3512_vm13 = vcmask 1039360  }
 0x17c   : > { %vm475_vm11 = vmand %vm469_vm14, %vm472_vm1  ;;  %v3126_v42 = vsel %vm465_vm2, 1, %v2857_v24  ;;  %vm844_vm3 = vcmp.eq.s32.totalorder %v3123_v39, 1  ;;  %vm3514_vm1 = vcmask 900096  }
 0x17d   : > { %vm478_vm12 = vmor %vm460_vm10, %vm475_vm11  ;;  %vm845_vm6 = vcmp.eq.s32.totalorder %v3126_v42, 1  ;;  %vm3516_vm10 = vcmask 1031168  }
 0x17e   : > { %vm487_vm7 = vmand %vm481_vm8, %vm484_vm9  ;;  %vm3518_vm8 = vcmask 883712   ;;  %vm3519_vm9 = vcmask 891904  }
 0x17f   : > { %vm3135_vm4 = vmor %vm478_vm12, %vm487_vm7 }
 0x180   : > { %vm3513_vm14 = vmmov %vm3512_vm13 }
 0x181   : > { %vm3515_vm2 = vmmov %vm3514_vm1 }
 0x182   : > { %vm3517_vm11 = vmmov %vm3516_vm10 }
 0x183   : > { %vm3520_vm12 = vmmov %vm3519_vm9 }
 0x184   : > { %vm3521_vm7 = vmmov %vm3518_vm8 }
 0x239   : > { %v834_v38 = vpop.f32.mrb[0].mxu1 }
 0x23a   : > { %v2233_v40 = vpop.f32.mrb[1].mxu1  ;;  %v835_v44 = vadd.f32 %v834_v38, %v691_v37 }
 0x23b   : > { %v763_v41 = vpop.f32.mrb[0].mxu0 }
 0x23c   : > { %v764_v43 = vadd.f32 %v763_v41, %v691_v37  ;;  %v765_v45 = vpop.f32.mrb[1].mxu0  ;;  %v840_v49 = vmax.f32 %v835_v44, 0.0 }
 0x23d   : > { %v766_v46 = vadd.f32 %v765_v45, %v691_v37 }
 0x23e   : > { %v838_v47 = vmax.f32 %v764_v43, 0.0  ;;  %v849_v52 = vsel %vm3135_vm4, %v840_v49, 0.0 }
 0x23f   : > { %v839_v48 = vmax.f32 %v766_v46, 0.0 }
 0x240   : > { %v847_v50 = vsel %vm844_vm3, %v838_v47, 0.0 }
 0x241   : > { %853 = vrot.lane.b32.xlu0 %v847_v50, %s2859_s22  ;;  %v848_v24 = vsel %vm845_vm6, %v839_v48, 0.0 }
 0x242   : > { %855 = vrot.lane.b32.xlu1 %v848_v24, %s2859_s22 }
 0x245   : > { %857 = vrot.lane.b32.xlu0 %v849_v52, %s2859_s22 }
 0x2b3   : > { %v854_v53 = vpop.permute.xlu0 %853 }
 0x2b4   : > { %866 = vst.msk [vmem:[#allocation3] sm:$0xff] %vm865_vm5, %v854_v53  ;;  %v856_v54 = vpop.permute.xlu1 %855 }
 0x2b5   : > { %v860_v59 = vsel %vm859_vm15, %v854_v53, %v856_v54 }
 0x2b7   : > { %v858_v55 = vpop.permute.xlu0 %857 }
 0x2b8   : > { %v861_v56 = vsel %vm859_vm15, %v856_v54, %v858_v55 }
 0x2b9   : > { %869 = vst.msk [vmem:[#allocation3 + $0x10] sm:$0xff] %vm868_vm0, %v861_v56 }
 0x2bb   : > { %v872_v57 = vld [vmem:[#allocation3] sm:$0xff] }
 0x2bc   : > { %889 = vrot.lane.b32.xlu1 %v872_v57, %s2848_s23  ;;  %878 = vrot.lane.b32.xlu0 %v872_v57, %s2849_s29 }
 0x2c0   : > { %911 = vrot.lane.b32.xlu1 %v872_v57, %s2851_s8  ;;  %900 = vrot.lane.b32.xlu0 %v872_v57, %s2852_s9  ;;  %v874_v58 = vld [vmem:[#allocation3 + $0x10] sm:$0xff] }
 0x2c1   : > { %v2599_v60 = vpack.i.bf16 %v874_v58, %v860_v59 }
 0x2c4   : > { %933 = vrot.lane.b32.xlu1 %v872_v57, %s2853_s14  ;;  %922 = vrot.lane.b32.xlu0 %v872_v57, %s2854_s17 }
 0x2c8   : > { %2600 = vrot.lane.b32.xlu0 %v2599_v60, %s2852_s9  ;;  %2590 = vrot.lane.b32.xlu1 %v2599_v60, %s2849_s29 }
 0x2cc   : > { %2610 = vrot.lane.b32.xlu0 %v2599_v60, %s2854_s17  ;;  %2595 = vrot.lane.b32.xlu1 %v2599_v60, %s2848_s23 }
 0x2d0   : > { %2620 = vrot.lane.b32.xlu0 %v2599_v60, %s2855_s13  ;;  %2605 = vrot.lane.b32.xlu1 %v2599_v60, %s2851_s8 }
 0x2d4   : > { %944 = vrot.lane.b32.xlu0 %v872_v57, %s2855_s13  ;;  %2615 = vrot.lane.b32.xlu1 %v2599_v60, %s2853_s14  ;;  %v870_v60 = vld [vmem:[#allocation4] sm:$0xff] }
 0x2d8   : > { %959 = vrot.lane.b32.xlu0 %v874_v58, %s2858_s15  ;;  %957 = vrot.lane.b32.xlu1 %v860_v59, %s2858_s15 }
 0x2dc   : > { %968 = vperm.xlu0 %2624, %v871_v61   ;;  %955 = vrot.lane.b32.xlu1 %v872_v57, %s2858_s15 }
 0x2e0   : > { %1128 = vrot.lane.b32.xlu0 %v3025_v21, %s2851_s8  ;;  %1124 = vrot.lane.b32.xlu1 %v3014_v19, %s2851_s8 }
 0x2e4   : > { %1126 = vrot.lane.b32.xlu1 %v3031_v22, %s2851_s8 }
 0x32e   : > { %v890_v62 = vpop.permute.xlu1 %889  ;;  %v879_v63 = vpop.permute.xlu0 %878 }
 0x332   : > { %v912_v1 = vpop.permute.xlu1 %911  ;;  %v901_v2 = vpop.permute.xlu0 %900 }
 0x336   : > { %v934_v3 = vpop.permute.xlu1 %933  ;;  %v923_v4 = vpop.permute.xlu0 %922 }
 0x33a   : > { %v2591_v5 = vpop.permute.xlu1 %2590  ;;  %v2601_v6 = vpop.permute.xlu0 %2600 }
 0x33b   : > { %v2593_v7 = vunpack.i.h.bf16 %v2591_v5  ;;  %v2592_v8 = vunpack.i.l.bf16 %v2591_v5  ;;  %v2603_v9 = vunpack.i.h.bf16 %v2601_v6  ;;  %v2602_v10 = vunpack.i.l.bf16 %v2601_v6 }
 0x33d   : > { %v2363_v11 = vpack.c.bf16 %v2593_v7, %v874_v58  ;;  %v884_v21 = vsel %vm3512_vm13, %v879_v63, %v2592_v8  ;;  %v885_v19 = vsel %vm3513_vm14, %v2592_v8, %v2593_v7  ;;  %v906_v17 = vsel %vm3514_vm1, %v901_v2, %v2602_v10 }
 0x33e   : > { %v2596_v12 = vpop.permute.xlu1 %2595  ;;  %v2611_v13 = vpop.permute.xlu0 %2610  ;;  %v2346_v22 = vpack.c.bf16 %v885_v19, %v860_v59  ;;  %v2348_v14 = vpack.c.bf16 %v884_v21, %v872_v57  ;;  %v907_v23 = vsel %vm3515_vm2, %v2602_v10, %v2603_v9  ;;  %vm3522_vm13 = vcmask 744448  }
 0x33f   : > { %v2598_v15 = vunpack.i.h.bf16 %v2596_v12  ;;  %v2597_v16 = vunpack.i.l.bf16 %v2596_v12  ;;  %2364 = vmatpush3.bf16.msra.mxu1 %v2363_v11  ;;  %v2612_v18 = vunpack.i.l.bf16 %v2611_v13  ;;  %v2613_v27 = vunpack.i.h.bf16 %v2611_v13  ;;  %vm3524_vm1 = vmmov %vm3522_vm13 }
 0x340   : > { %2347 = vmatprep.subr.bf16.mxu0 %v2346_v22  ;;  %2365 = vmatprep.subr.bf16.mxu1 %v2850_v20  ;;  %vm3523_vm14 = vcmask 752640  }
 0x341   : > { %v895_v25 = vsel %vm3516_vm10, %v890_v62, %v2597_v16  ;;  %v2366_v26 = vpack.c.bf16 %v2603_v9, %v2598_v15  ;;  %2349 = vmatpush1.bf16.msra.mxu0 %v2348_v14  ;;  %v896_v28 = vsel %vm3517_vm11, %v2597_v16, %v2598_v15  ;;  %v928_v35 = vsel %vm3518_vm8, %v923_v4, %v2612_v18  ;;  %vm3525_vm2 = vmmov %vm3523_vm14 }
 0x342   : > { %v2352_v29 = vpack.c.bf16 %v906_v17, %v895_v25  ;;  %v2606_v30 = vpop.permute.xlu1 %2605  ;;  %v2621_v31 = vpop.permute.xlu0 %2620  ;;  %v2350_v32 = vpack.c.bf16 %v907_v23, %v896_v28  ;;  %v929_v43 = vsel %vm3521_vm7, %v2612_v18, %v2613_v27  ;;  %vm3526_vm10 = vcmask 736256  }
 0x343   : > { %v2608_v33 = vunpack.i.h.bf16 %v2606_v30  ;;  %v2607_v34 = vunpack.i.l.bf16 %v2606_v30  ;;  %2367 = vmatpush3.bf16.msra.mxu1 %v2366_v26  ;;  %v2623_v36 = vunpack.i.h.bf16 %v2621_v31  ;;  %v2622_v37 = vunpack.i.l.bf16 %v2621_v31  ;;  %vm3527_vm11 = vmmov %vm3526_vm10 }
 0x344   : > { %2351 = vmatprep.subr.bf16.mxu0 %v2350_v32  ;;  %2368 = vmatprep.subr.bf16.mxu1 %v2850_v20  ;;  %vm3528_vm8 = vcmask 588800   ;;  %vm3531_vm7 = vcmask 891904   ;;  %v2148_v32 = vld [vmem:[%s3472_s2 + $0x8] sm:$0xff] }
 0x345   : > { %v917_v38 = vsel %vm3519_vm9, %v912_v1, %v2607_v34  ;;  %v2369_v40 = vpack.c.bf16 %v2613_v27, %v2608_v33  ;;  %2353 = vmatpush1.bf16.msra.mxu0 %v2352_v29  ;;  %v918_v41 = vsel %vm3520_vm12, %v2607_v34, %v2608_v33  ;;  %v951_v50 = vsel %vm3522_vm13, %v2622_v37, %v2623_v36  ;;  %vm3530_vm12 = vmmov %vm3528_vm8 }
 0x346   : > { %v2356_v44 = vpack.c.bf16 %v928_v35, %v917_v38  ;;  %v2616_v45 = vpop.permute.xlu1 %2615  ;;  %v945_v46 = vpop.permute.xlu0 %944  ;;  %v2354_v47 = vpack.c.bf16 %v929_v43, %v918_v41  ;;  %vm3529_vm9 = vmmov 0   ;;  %vm3532_vm13 = vmmov %vm3531_vm7 }
 0x347   : > { %v2618_v48 = vunpack.i.h.bf16 %v2616_v45  ;;  %v2617_v49 = vunpack.i.l.bf16 %v2616_v45  ;;  %2370 = vmatpush3.bf16.msra.mxu1 %v2369_v40  ;;  %v950_v53 = vsel %vm3524_vm1, %v945_v46, %v2622_v37 }
 0x348   : > { %2355 = vmatprep.subr.bf16.mxu0 %v2354_v47  ;;  %2371 = vmatprep.subr.bf16.mxu1 %v2850_v20 }
 0x349   : > { %v2372_v24 = vpack.c.bf16 %v2623_v36, %v2618_v48  ;;  %v939_v52 = vsel %vm3523_vm14, %v934_v3, %v2617_v49  ;;  %2357 = vmatpush1.bf16.msra.mxu0 %v2356_v44  ;;  %v940_v54 = vsel %vm3525_vm2, %v2617_v49, %v2618_v48  ;;  %vm3533_vm14 = vcmask 1039360  }
 0x34a   : > { %v2360_v55 = vpack.c.bf16 %v950_v53, %v939_v52  ;;  %v958_v56 = vpop.permute.xlu1 %957  ;;  %v960_v57 = vpop.permute.xlu0 %959  ;;  %v2358_v58 = vpack.c.bf16 %v951_v50, %v940_v54  ;;  %vm3534_vm1 = vmmov %vm3533_vm14  ;;  %vm3535_vm2 = vcmask 900096  }
 0x34b   : > { %2373 = vmatpush3.bf16.msra.mxu1 %v2372_v24  ;;  %v962_v59 = vsel %vm3526_vm10, %v958_v56, %v960_v57  ;;  %vm3536_vm10 = vmmov %vm3535_vm2 }
 0x34c   : > { %2359 = vmatprep.subr.bf16.mxu0 %v2358_v58  ;;  %2250 = vmatprep.subr.mxu1 %v2831_v0 }
 0x34d   : > { %2361 = vmatpush1.bf16.msra.mxu0 %v2360_v55 }
 0x34e   : > { %v956_v61 = vpop.permute.xlu1 %955  ;;  %990 = vmatprep.subr.mxu0 %v962_v59 }
 0x34f   : > { %v961_v62 = vsel %vm3527_vm11, %v956_v61, %v958_v56  ;;  %2251 = vmatpush3.msra.mxu1 %v960_v57  ;;  %vm3537_vm11 = vcmask 1031168  }
 0x350   : > { %2253 = vmatmul.mubr.msk.f32.vlgmr.msra.gmra.mrb[2].mxu1 %vm3528_vm8, %v870_v60  ;;  %2390 = vmatprep.subr.bf16.mxu1 %v2850_v20  ;;  %vm3538_vm8 = vmmov %vm3537_vm11 }
 0x351   : > { %991 = vmatpush1.msra.mxu0 %v961_v62  ;;  %2273 = vmatprep.mubr.msk.f32.mxu1 %vm3529_vm9, %v2831_v0 }
 0x352   : > { %2145 = vmatmul.mubr.msk.f32.vlgmr.msra.gmra.mrb[2].mxu0 %vm3530_vm12, %v870_v60  ;;  %v1125_v63 = vpop.permute.xlu1 %1124  ;;  %vm3539_vm12 = vcmask 883712  }
 0x353   : > { %1328 = vmatprep.mubr.f32.mxu0 %v2831_v0 }
 0x356   : > { %v1127_v6 = vpop.permute.xlu1 %1126 }
 0x357   : > { %v1130_v19 = vsel %vm3531_vm7, %v1125_v63, %v1127_v6 }
 0x35b   : > { %v969_v1 = vpop.permute.xlu0 %968 }
 0x35f   : > { %v1129_v9 = vpop.permute.xlu0 %1128 }
 0x360   : > { %v1131_v13 = vsel %vm3532_vm13, %v1127_v6, %v1129_v9  ;;  %vm3540_vm13 = vmmov %vm3531_vm7 }
 0x423   : > { %v1111_v2 = vpop.f32.mrb[2].mxu1 }
 0x424   : > { %v1112_v3 = vadd.f32 %v1111_v2, %v969_v1  ;;  %v2254_v4 = vpop.f32.mrb[3].mxu1 }
 0x425   : > { %v1040_v5 = vpop.f32.mrb[2].mxu0 }
 0x426   : > { %v1041_v7 = vadd.f32 %v1040_v5, %v969_v1  ;;  %v1042_v8 = vpop.f32.mrb[3].mxu0  ;;  %v1117_v11 = vmul.f32 0.1, %v1112_v3 }
 0x427   : > { %v1043_v10 = vadd.f32 %v1042_v8, %v969_v1 }
 0x428   : > { %v1115_v21 = vmul.f32 0.1, %v1041_v7  ;;  %v1137_v15 = vadd.f32 %v1129_v9, %v1117_v11 }
 0x429   : > { %v1116_v12 = vmul.f32 0.1, %v1043_v10 }
 0x42a   : > { %v1135_v22 = vadd.f32 %v1130_v19, %v1115_v21  ;;  %v1140_v18 = vsel %vm3135_vm4, %v1137_v15, 0.0 }
 0x42b   : > { %v1136_v14 = vadd.f32 %v1131_v13, %v1116_v12 }
 0x42c   : > { %v1138_v16 = vsel %vm844_vm3, %v1135_v22, 0.0 }
 0x42d   : > { %1144 = vrot.lane.b32.xlu1 %v1138_v16, %s2859_s22  ;;  %v1139_v17 = vsel %vm845_vm6, %v1136_v14, 0.0 }
 0x42e   : > { %1146 = vrot.lane.b32.xlu0 %v1139_v17, %s2859_s22 }
 0x431   : > { %1148 = vrot.lane.b32.xlu1 %v1140_v18, %s2859_s22 }
 0x49f   : > { %v1145_v23 = vpop.permute.xlu1 %1144 }
 0x4a0   : > { %1155 = vst.msk [vmem:[#allocation2] sm:$0xff] %vm865_vm5, %v1145_v23  ;;  %v1147_v25 = vpop.permute.xlu0 %1146 }
 0x4a1   : > { %v3230_v30 = vsel %vm859_vm15, %v1145_v23, %v1147_v25 }
 0x4a3   : > { %v1149_v26 = vpop.permute.xlu1 %1148 }
 0x4a4   : > { %v1151_v27 = vsel %vm859_vm15, %v1147_v25, %v1149_v26 }
 0x4a5   : > { %1157 = vst.msk [vmem:[#allocation2 + $0x10] sm:$0xff] %vm868_vm0, %v1151_v27 }
 0x4a7   : > { %v3213_v28 = vld [vmem:[#allocation2] sm:$0xff] }
 0x4a8   : > { %1179 = vrot.lane.b32.xlu0 %v3213_v28, %s2848_s23  ;;  %1168 = vrot.lane.b32.xlu1 %v3213_v28, %s2849_s29 }
 0x4ac   : > { %1201 = vrot.lane.b32.xlu0 %v3213_v28, %s2851_s8  ;;  %1190 = vrot.lane.b32.xlu1 %v3213_v28, %s2852_s9  ;;  %v3223_v29 = vld [vmem:[#allocation2 + $0x10] sm:$0xff] }
 0x4ad   : > { %v2635_v31 = vpack.i.bf16 %v3223_v29, %v3230_v30 }
 0x4b0   : > { %1223 = vrot.lane.b32.xlu0 %v3213_v28, %s2853_s14  ;;  %1212 = vrot.lane.b32.xlu1 %v3213_v28, %s2854_s17 }
 0x4b4   : > { %2636 = vrot.lane.b32.xlu1 %v2635_v31, %s2852_s9  ;;  %2626 = vrot.lane.b32.xlu0 %v2635_v31, %s2849_s29 }
 0x4b8   : > { %2646 = vrot.lane.b32.xlu1 %v2635_v31, %s2854_s17  ;;  %2631 = vrot.lane.b32.xlu0 %v2635_v31, %s2848_s23 }
 0x4bc   : > { %2656 = vrot.lane.b32.xlu1 %v2635_v31, %s2855_s13  ;;  %2641 = vrot.lane.b32.xlu0 %v2635_v31, %s2851_s8 }
 0x4c0   : > { %1234 = vrot.lane.b32.xlu1 %v3213_v28, %s2855_s13  ;;  %2651 = vrot.lane.b32.xlu0 %v2635_v31, %s2853_s14 }
 0x4c4   : > { %1249 = vrot.lane.b32.xlu1 %v3223_v29, %s2858_s15  ;;  %1247 = vrot.lane.b32.xlu0 %v3230_v30, %s2858_s15 }
 0x4c8   : > { %1258 = vperm.xlu1 %2588, %v2148_v32   ;;  %1245 = vrot.lane.b32.xlu0 %v3213_v28, %s2858_s15 }
 0x51a   : > { %v1180_v33 = vpop.permute.xlu0 %1179  ;;  %v1169_v34 = vpop.permute.xlu1 %1168 }
 0x51e   : > { %v1202_v35 = vpop.permute.xlu0 %1201  ;;  %v1191_v36 = vpop.permute.xlu1 %1190 }
 0x522   : > { %v1224_v37 = vpop.permute.xlu0 %1223  ;;  %v1213_v38 = vpop.permute.xlu1 %1212 }
 0x526   : > { %v2627_v40 = vpop.permute.xlu0 %2626  ;;  %v2637_v41 = vpop.permute.xlu1 %2636 }
 0x527   : > { %v2629_v43 = vunpack.i.h.bf16 %v2627_v40  ;;  %v2628_v44 = vunpack.i.l.bf16 %v2627_v40  ;;  %v2639_v45 = vunpack.i.h.bf16 %v2637_v41  ;;  %v2638_v46 = vunpack.i.l.bf16 %v2637_v41 }
 0x529   : > { %v2391_v47 = vpack.c.bf16 %v2629_v43, %v3223_v29  ;;  %v1174_v48 = vsel %vm3533_vm14, %v1169_v34, %v2628_v44  ;;  %v1175_v49 = vsel %vm3534_vm1, %v2628_v44, %v2629_v43  ;;  %v1196_v56 = vsel %vm3535_vm2, %v1191_v36, %v2638_v46  ;;  %vm3541_vm14 = vmmov %vm3539_vm12  ;;  %v2147_v34 = vld [vmem:[%s3471_s1 + $0x8] sm:$0xff] }
 0x52a   : > { %v2376_v50 = vpack.c.bf16 %v1174_v48, %v3213_v28  ;;  %v2632_v24 = vpop.permute.xlu0 %2631  ;;  %v2647_v52 = vpop.permute.xlu1 %2646  ;;  %v2374_v53 = vpack.c.bf16 %v1175_v49, %v3230_v30  ;;  %v1197_v58 = vsel %vm3536_vm10, %v2638_v46, %v2639_v45  ;;  %vm3542_vm1 = vcmask 744448  }
 0x52b   : > { %v2634_v54 = vunpack.i.h.bf16 %v2632_v24  ;;  %v2633_v55 = vunpack.i.l.bf16 %v2632_v24  ;;  %2392 = vmatpush3.bf16.msra.mxu1 %v2391_v47  ;;  %v2648_v57 = vunpack.i.l.bf16 %v2647_v52  ;;  %v2649_v61 = vunpack.i.h.bf16 %v2647_v52  ;;  %vm3544_vm10 = vmmov %vm3542_vm1 }
 0x52c   : > { %2375 = vmatprep.subr.bf16.mxu0 %v2374_v53  ;;  %2393 = vmatprep.subr.bf16.mxu1 %v2850_v20  ;;  %vm3543_vm2 = vcmask 752640  }
 0x52d   : > { %v1185_v59 = vsel %vm3537_vm11, %v1180_v33, %v2633_v55  ;;  %v2394_v60 = vpack.c.bf16 %v2639_v45, %v2634_v54  ;;  %2377 = vmatpush1.bf16.msra.mxu0 %v2376_v50  ;;  %v1186_v62 = vsel %vm3538_vm8, %v2633_v55, %v2634_v54  ;;  %v1218_v6 = vsel %vm3539_vm12, %v1213_v38, %v2648_v57  ;;  %vm3545_vm11 = vmmov %vm3543_vm2 }
 0x52e   : > { %v2380_v63 = vpack.c.bf16 %v1196_v56, %v1185_v59  ;;  %v2642_v1 = vpop.permute.xlu0 %2641  ;;  %v2657_v2 = vpop.permute.xlu1 %2656  ;;  %v2378_v3 = vpack.c.bf16 %v1197_v58, %v1186_v62  ;;  %v1219_v21 = vsel %vm3541_vm14, %v2648_v57, %v2649_v61  ;;  %vm3546_vm8 = vcmask 736256  }
 0x52f   : > { %v2644_v4 = vunpack.i.h.bf16 %v2642_v1  ;;  %v2643_v5 = vunpack.i.l.bf16 %v2642_v1  ;;  %2395 = vmatpush3.bf16.msra.mxu1 %v2394_v60  ;;  %v2659_v7 = vunpack.i.h.bf16 %v2657_v2  ;;  %v2658_v8 = vunpack.i.l.bf16 %v2657_v2  ;;  %vm3547_vm12 = vmmov %vm3546_vm8 }
 0x530   : > { %2379 = vmatprep.subr.bf16.mxu0 %v2378_v3  ;;  %2396 = vmatprep.subr.bf16.mxu1 %v2850_v20  ;;  %vm3550_vm14 = vcmask 1039360  }
 0x531   : > { %v1207_v9 = vsel %vm3531_vm7, %v1202_v35, %v2643_v5  ;;  %v2397_v10 = vpack.c.bf16 %v2649_v61, %v2644_v4  ;;  %2381 = vmatpush1.bf16.msra.mxu0 %v2380_v63  ;;  %v1208_v11 = vsel %vm3540_vm13, %v2643_v5, %v2644_v4  ;;  %v1241_v16 = vsel %vm3542_vm1, %v2658_v8, %v2659_v7  ;;  %v2151_v61 = vld [vmem:[%s3474_s4 + $0x8] sm:$0xff]  ;;  %vm3551_vm1 = vmmov %vm3550_vm14 }
 0x532   : > { %v2384_v19 = vpack.c.bf16 %v1218_v6, %v1207_v9  ;;  %v2652_v12 = vpop.permute.xlu0 %2651  ;;  %v1235_v13 = vpop.permute.xlu1 %1234  ;;  %v2382_v22 = vpack.c.bf16 %v1219_v21, %v1208_v11  ;;  %vm3548_vm7 = vcmask 588800  }
 0x533   : > { %v2654_v14 = vunpack.i.h.bf16 %v2652_v12  ;;  %v2653_v15 = vunpack.i.l.bf16 %v2652_v12  ;;  %2398 = vmatpush3.bf16.msra.mxu1 %v2397_v10  ;;  %v1240_v23 = vsel %vm3544_vm10, %v1235_v13, %v2658_v8  ;;  %vm3549_vm13 = vmmov %vm3548_vm7 }
 0x534   : > { %2383 = vmatprep.subr.bf16.mxu0 %v2382_v22  ;;  %2399 = vmatprep.subr.bf16.mxu1 %v2850_v20 }
 0x535   : > { %v2400_v17 = vpack.c.bf16 %v2659_v7, %v2654_v14  ;;  %v1229_v18 = vsel %vm3543_vm2, %v1224_v37, %v2653_v15  ;;  %2385 = vmatpush1.bf16.msra.mxu0 %v2384_v19  ;;  %v1230_v25 = vsel %vm3545_vm11, %v2653_v15, %v2654_v14  ;;  %vm3552_vm2 = vcmask 900096  }
 0x536   : > { %v2388_v26 = vpack.c.bf16 %v1240_v23, %v1229_v18  ;;  %v1248_v27 = vpop.permute.xlu0 %1247  ;;  %v1250_v31 = vpop.permute.xlu1 %1249  ;;  %v2386_v32 = vpack.c.bf16 %v1241_v16, %v1230_v25  ;;  %vm3553_vm10 = vmmov %vm3552_vm2  ;;  %vm3554_vm11 = vcmask 1031168  }
 0x537   : > { %2401 = vmatpush3.bf16.msra.mxu1 %v2400_v17  ;;  %v1252_v33 = vsel %vm3546_vm8, %v1248_v27, %v1250_v31  ;;  %vm3555_vm8 = vmmov %vm3554_vm11 }
 0x538   : > { %2387 = vmatprep.subr.bf16.mxu0 %v2386_v32  ;;  %2271 = vmatprep.subr.mxu1 %v2831_v0 }
 0x539   : > { %2389 = vmatpush1.bf16.msra.mxu0 %v2388_v26 }
 0x53a   : > { %v1246_v35 = vpop.permute.xlu0 %1245  ;;  %1280 = vmatprep.subr.mxu0 %v1252_v33 }
 0x53b   : > { %v1251_v36 = vsel %vm3547_vm12, %v1246_v35, %v1248_v27  ;;  %2272 = vmatpush3.msra.mxu1 %v1250_v31  ;;  %vm3556_vm12 = vcmask 883712  }
 0x53c   : > { %2274 = vmatmul.mubr.msk.f32.vlgmr.msra.gmra.mrb[4].mxu1 %vm3548_vm7, %v2147_v34  ;;  %2418 = vmatprep.subr.bf16.mxu1 %v2850_v20  ;;  %vm3557_vm7 = vcmask 891904  }
 0x53d   : > { %1281 = vmatpush1.msra.mxu0 %v1251_v36  ;;  %2294 = vmatprep.mubr.msk.f32.mxu1 %vm3529_vm9, %v2831_v0 }
 0x53e   : > { %2149 = vmatmul.mubr.msk.f32.vlgmr.msra.gmra.mrb[4].mxu0 %vm3549_vm13, %v2147_v34  ;;  %vm3558_vm13 = vmmov %vm3557_vm7 }
 0x53f   : > { %1598 = vmatprep.mubr.f32.mxu0 %v2831_v0 }
 0x547   : > { %v1259_v40 = vpop.permute.xlu1 %1258 }
 0x60f   : > { %v1401_v37 = vpop.f32.mrb[4].mxu1 }
 0x610   : > { %v2275_v38 = vpop.f32.mrb[5].mxu1  ;;  %v1402_v43 = vadd.f32 %v1401_v37, %v1259_v40 }
 0x611   : > { %v1330_v41 = vpop.f32.mrb[4].mxu0 }
 0x612   : > { %v1331_v44 = vadd.f32 %v1330_v41, %v1259_v40  ;;  %v1332_v45 = vpop.f32.mrb[5].mxu0  ;;  %v1407_v49 = vmax.f32 %v1402_v43, 0.0 }
 0x613   : > { %v1333_v46 = vadd.f32 %v1332_v45, %v1259_v40 }
 0x614   : > { %v1405_v47 = vmax.f32 %v1331_v44, 0.0  ;;  %v1410_v52 = vsel %vm3135_vm4, %v1407_v49, 0.0 }
 0x615   : > { %v1406_v48 = vmax.f32 %v1333_v46, 0.0 }
 0x616   : > { %v1408_v50 = vsel %vm844_vm3, %v1405_v47, 0.0 }
 0x617   : > { %1414 = vrot.lane.b32.xlu0 %v1408_v50, %s2859_s22  ;;  %v1409_v24 = vsel %vm845_vm6, %v1406_v48, 0.0 }
 0x618   : > { %1416 = vrot.lane.b32.xlu1 %v1409_v24, %s2859_s22 }
 0x61b   : > { %1418 = vrot.lane.b32.xlu0 %v1410_v52, %s2859_s22 }
 0x689   : > { %v1415_v53 = vpop.permute.xlu0 %1414 }
 0x68a   : > { %1425 = vst.msk [vmem:[#allocation3] sm:$0xff] %vm865_vm5, %v1415_v53  ;;  %v1417_v54 = vpop.permute.xlu1 %1416 }
 0x68b   : > { %v1420_v55 = vsel %vm859_vm15, %v1415_v53, %v1417_v54 }
 0x68d   : > { %v1419_v56 = vpop.permute.xlu0 %1418 }
 0x68e   : > { %v1421_v57 = vsel %vm859_vm15, %v1417_v54, %v1419_v56 }
 0x68f   : > { %1427 = vst.msk [vmem:[#allocation3 + $0x10] sm:$0xff] %vm868_vm0, %v1421_v57 }
 0x691   : > { %v1432_v58 = vld [vmem:[#allocation3] sm:$0xff] }
 0x692   : > { %1449 = vrot.lane.b32.xlu1 %v1432_v58, %s2848_s23  ;;  %1438 = vrot.lane.b32.xlu0 %v1432_v58, %s2849_s29 }
 0x696   : > { %1471 = vrot.lane.b32.xlu1 %v1432_v58, %s2851_s8  ;;  %1460 = vrot.lane.b32.xlu0 %v1432_v58, %s2852_s9  ;;  %v1434_v59 = vld [vmem:[#allocation3 + $0x10] sm:$0xff] }
 0x697   : > { %v2670_v60 = vpack.i.bf16 %v1434_v59, %v1420_v55 }
 0x69a   : > { %1493 = vrot.lane.b32.xlu1 %v1432_v58, %s2853_s14  ;;  %1482 = vrot.lane.b32.xlu0 %v1432_v58, %s2854_s17 }
 0x69e   : > { %2671 = vrot.lane.b32.xlu0 %v2670_v60, %s2852_s9  ;;  %2661 = vrot.lane.b32.xlu1 %v2670_v60, %s2849_s29 }
 0x6a2   : > { %2681 = vrot.lane.b32.xlu0 %v2670_v60, %s2854_s17  ;;  %2666 = vrot.lane.b32.xlu1 %v2670_v60, %s2848_s23 }
 0x6a6   : > { %2691 = vrot.lane.b32.xlu0 %v2670_v60, %s2855_s13  ;;  %2676 = vrot.lane.b32.xlu1 %v2670_v60, %s2851_s8 }
 0x6aa   : > { %1504 = vrot.lane.b32.xlu0 %v1432_v58, %s2855_s13  ;;  %2686 = vrot.lane.b32.xlu1 %v2670_v60, %s2853_s14  ;;  %v1429_v60 = vld [vmem:[#allocation4 + $0x8] sm:$0xff] }
 0x6ae   : > { %1519 = vrot.lane.b32.xlu0 %v1434_v59, %s2858_s15  ;;  %1517 = vrot.lane.b32.xlu1 %v1420_v55, %s2858_s15 }
 0x6b2   : > { %1528 = vperm.xlu0 %2624, %v2151_v61   ;;  %1515 = vrot.lane.b32.xlu1 %v1432_v58, %s2858_s15 }
 0x6b6   : > { %1686 = vrot.lane.b32.xlu0 %v3230_v30, %s2851_s8  ;;  %1684 = vrot.lane.b32.xlu1 %v3213_v28, %s2851_s8 }
 0x6ba   : > { %1688 = vrot.lane.b32.xlu1 %v3223_v29, %s2851_s8 }
 0x704   : > { %v1450_v62 = vpop.permute.xlu1 %1449  ;;  %v1439_v63 = vpop.permute.xlu0 %1438 }
 0x708   : > { %v1472_v1 = vpop.permute.xlu1 %1471  ;;  %v1461_v2 = vpop.permute.xlu0 %1460 }
 0x70c   : > { %v1494_v3 = vpop.permute.xlu1 %1493  ;;  %v1483_v4 = vpop.permute.xlu0 %1482 }
 0x710   : > { %v2662_v5 = vpop.permute.xlu1 %2661  ;;  %v2672_v6 = vpop.permute.xlu0 %2671 }
 0x711   : > { %v2664_v7 = vunpack.i.h.bf16 %v2662_v5  ;;  %v2663_v8 = vunpack.i.l.bf16 %v2662_v5  ;;  %v2674_v9 = vunpack.i.h.bf16 %v2672_v6  ;;  %v2673_v10 = vunpack.i.l.bf16 %v2672_v6 }
 0x713   : > { %v2419_v11 = vpack.c.bf16 %v2664_v7, %v1434_v59  ;;  %v1444_v30 = vsel %vm3550_vm14, %v1439_v63, %v2663_v8  ;;  %v1445_v28 = vsel %vm3551_vm1, %v2663_v8, %v2664_v7  ;;  %v1466_v14 = vsel %vm3552_vm2, %v1461_v2, %v2673_v10  ;;  %vm3559_vm14 = vmmov %vm3556_vm12 }
 0x714   : > { %v2404_v21 = vpack.c.bf16 %v1444_v30, %v1432_v58  ;;  %v2667_v19 = vpop.permute.xlu1 %2666  ;;  %v2682_v29 = vpop.permute.xlu0 %2681  ;;  %v2402_v12 = vpack.c.bf16 %v1445_v28, %v1420_v55  ;;  %v1467_v16 = vsel %vm3553_vm10, %v2673_v10, %v2674_v9  ;;  %vm3560_vm1 = vcmask 744448  }
 0x715   : > { %v2669_v13 = vunpack.i.h.bf16 %v2667_v19  ;;  %v2668_v22 = vunpack.i.l.bf16 %v2667_v19  ;;  %2420 = vmatpush3.bf16.msra.mxu1 %v2419_v11  ;;  %v2683_v15 = vunpack.i.l.bf16 %v2682_v29  ;;  %v2684_v23 = vunpack.i.h.bf16 %v2682_v29  ;;  %vm3562_vm10 = vmmov %vm3560_vm1 }
 0x716   : > { %2403 = vmatprep.subr.bf16.mxu0 %v2402_v12  ;;  %2421 = vmatprep.subr.bf16.mxu1 %v2850_v20  ;;  %vm3561_vm2 = vcmask 752640  }
 0x717   : > { %v1455_v17 = vsel %vm3554_vm11, %v1450_v62, %v2668_v22  ;;  %v2422_v18 = vpack.c.bf16 %v2674_v9, %v2669_v13  ;;  %2405 = vmatpush1.bf16.msra.mxu0 %v2404_v21  ;;  %v1456_v25 = vsel %vm3555_vm8, %v2668_v22, %v2669_v13  ;;  %v1488_v35 = vsel %vm3556_vm12, %v1483_v4, %v2683_v15  ;;  %vm3563_vm11 = vmmov %vm3561_vm2 }
 0x718   : > { %v2408_v26 = vpack.c.bf16 %v1466_v14, %v1455_v17  ;;  %v2677_v27 = vpop.permute.xlu1 %2676  ;;  %v2692_v31 = vpop.permute.xlu0 %2691  ;;  %v2406_v32 = vpack.c.bf16 %v1467_v16, %v1456_v25  ;;  %v1489_v43 = vsel %vm3559_vm14, %v2683_v15, %v2684_v23  ;;  %vm3564_vm8 = vcmask 736256  }
 0x719   : > { %v2679_v33 = vunpack.i.h.bf16 %v2677_v27  ;;  %v2678_v34 = vunpack.i.l.bf16 %v2677_v27  ;;  %2423 = vmatpush3.bf16.msra.mxu1 %v2422_v18  ;;  %v2694_v36 = vunpack.i.h.bf16 %v2692_v31  ;;  %v2693_v37 = vunpack.i.l.bf16 %v2692_v31  ;;  %vm3565_vm12 = vmmov %vm3564_vm8 }
 0x71a   : > { %2407 = vmatprep.subr.bf16.mxu0 %v2406_v32  ;;  %2424 = vmatprep.subr.bf16.mxu1 %v2850_v20  ;;  %vm3568_vm14 = vcmask 891904  }
 0x71b   : > { %v1477_v38 = vsel %vm3557_vm7, %v1472_v1, %v2678_v34  ;;  %v2425_v40 = vpack.c.bf16 %v2684_v23, %v2679_v33  ;;  %2409 = vmatpush1.bf16.msra.mxu0 %v2408_v26  ;;  %v1478_v41 = vsel %vm3558_vm13, %v2678_v34, %v2679_v33  ;;  %v1511_v50 = vsel %vm3560_vm1, %v2693_v37, %v2694_v36  ;;  %v1719_v26 = vld [vmem:[%s3476_s6] sm:$0xff] }
 0x71c   : > { %v2412_v44 = vpack.c.bf16 %v1488_v35, %v1477_v38  ;;  %v2687_v45 = vpop.permute.xlu1 %2686  ;;  %v1505_v46 = vpop.permute.xlu0 %1504  ;;  %v2410_v47 = vpack.c.bf16 %v1489_v43, %v1478_v41  ;;  %vm3566_vm7 = vcmask 588800   ;;  %vm3576_vm1 = vcmask 883712  }
 0x71d   : > { %v2689_v48 = vunpack.i.h.bf16 %v2687_v45  ;;  %v2688_v49 = vunpack.i.l.bf16 %v2687_v45  ;;  %2426 = vmatpush3.bf16.msra.mxu1 %v2425_v40  ;;  %v1510_v53 = vsel %vm3562_vm10, %v1505_v46, %v2693_v37  ;;  %vm3567_vm13 = vmmov %vm3566_vm7 }
 0x71e   : > { %2411 = vmatprep.subr.bf16.mxu0 %v2410_v47  ;;  %2427 = vmatprep.subr.bf16.mxu1 %v2850_v20 }
 0x71f   : > { %v2428_v24 = vpack.c.bf16 %v2694_v36, %v2689_v48  ;;  %v1499_v52 = vsel %vm3561_vm2, %v1494_v3, %v2688_v49  ;;  %2413 = vmatpush1.bf16.msra.mxu0 %v2412_v44  ;;  %v1500_v54 = vsel %vm3563_vm11, %v2688_v49, %v2689_v48  ;;  %vm3579_vm11 = vmmov %vm3576_vm1 }
 0x720   : > { %v2416_v55 = vpack.c.bf16 %v1510_v53, %v1499_v52  ;;  %v1518_v56 = vpop.permute.xlu1 %1517  ;;  %v1520_v57 = vpop.permute.xlu0 %1519  ;;  %v2414_v58 = vpack.c.bf16 %v1511_v50, %v1500_v54 }
 0x721   : > { %2429 = vmatpush3.bf16.msra.mxu1 %v2428_v24  ;;  %v1522_v59 = vsel %vm3564_vm8, %v1518_v56, %v1520_v57  ;;  %vm3580_vm8 = vcmask 744448  }
 0x722   : > { %2415 = vmatprep.subr.bf16.mxu0 %v2414_v58  ;;  %2292 = vmatprep.subr.mxu1 %v2831_v0 }
 0x723   : > { %2417 = vmatpush1.bf16.msra.mxu0 %v2416_v55 }
 0x724   : > { %v1516_v61 = vpop.permute.xlu1 %1515  ;;  %1550 = vmatprep.subr.mxu0 %v1522_v59 }
 0x725   : > { %v1521_v62 = vsel %vm3565_vm12, %v1516_v61, %v1518_v56  ;;  %2293 = vmatpush3.msra.mxu1 %v1520_v57  ;;  %vm3581_vm12 = vcmask 752640  }
 0x726   : > { %2295 = vmatmul.mubr.msk.f32.vlgmr.msra.gmra.mrb[6].mxu1 %vm3566_vm7, %v1429_v60  ;;  %2446 = vmatprep.subr.bf16.mxu1 %v2850_v20  ;;  %vm3582_vm7 = vmmov %vm3580_vm8 }
 0x727   : > { %1551 = vmatpush1.msra.mxu0 %v1521_v62  ;;  %2315 = vmatprep.mubr.msk.f32.mxu1 %vm3529_vm9, %v2831_v0  ;;  %vm3569_vm9 = vmmov %vm3568_vm14 }
 0x728   : > { %2152 = vmatmul.mubr.msk.f32.vlgmr.msra.gmra.mrb[6].mxu0 %vm3567_vm13, %v1429_v60  ;;  %v1685_v1 = vpop.permute.xlu1 %1684  ;;  %vm3577_vm2 = vmmov %vm3569_vm9 }
 0x729   : > { %1886 = vmatprep.mubr.f32.mxu0 %v2831_v0  ;;  %vm3578_vm10 = vmmov %vm3577_vm2 }
 0x72a   : > { %vm3583_vm13 = vmmov %vm3581_vm12 }
 0x72c   : > { %v1689_v30 = vpop.permute.xlu1 %1688 }
 0x731   : > { %v1529_v63 = vpop.permute.xlu0 %1528 }
 0x735   : > { %v1687_v6 = vpop.permute.xlu0 %1686 }
 0x736   : > { %v1690_v28 = vsel %vm3568_vm14, %v1685_v1, %v1687_v6  ;;  %v1691_v19 = vsel %vm3569_vm9, %v1687_v6, %v1689_v30  ;;  %vm3584_vm14 = vcmask 736256  }
 0x737   : > { %vm3585_vm9 = vmmov %vm3584_vm14 }
 0x7f9   : > { %v1671_v2 = vpop.f32.mrb[6].mxu1 }
 0x7fa   : > { %v1672_v3 = vadd.f32 %v1671_v2, %v1529_v63  ;;  %v2296_v4 = vpop.f32.mrb[7].mxu1 }
 0x7fb   : > { %v1600_v5 = vpop.f32.mrb[6].mxu0 }
 0x7fc   : > { %v1601_v7 = vadd.f32 %v1600_v5, %v1529_v63  ;;  %v1602_v8 = vpop.f32.mrb[7].mxu0  ;;  %v1677_v10 = vmul.f32 0.1, %v1672_v3 }
 0x7fd   : > { %v1603_v9 = vadd.f32 %v1602_v8, %v1529_v63 }
 0x7fe   : > { %v1675_v11 = vmul.f32 0.1, %v1601_v7  ;;  %v1697_v13 = vadd.f32 %v1689_v30, %v1677_v10 }
 0x7ff   : > { %v1676_v21 = vmul.f32 0.1, %v1603_v9 }
 0x800   : > { %v1695_v29 = vadd.f32 %v1690_v28, %v1675_v11  ;;  %v1700_v15 = vsel %vm3135_vm4, %v1697_v13, 0.0  ;;  %vm3572_vm4 = vcmask 900096  }
 0x801   : > { %v1696_v12 = vadd.f32 %v1691_v19, %v1676_v21 }
 0x802   : > { %v1698_v22 = vsel %vm844_vm3, %v1695_v29, 0.0  ;;  %vm3570_vm3 = vcmask 1039360  }
 0x803   : > { %1704 = vrot.lane.b32.xlu0 %v1698_v22, %s2859_s22  ;;  %v1699_v14 = vsel %vm845_vm6, %v1696_v12, 0.0  ;;  %vm3571_vm6 = vmmov %vm3570_vm3 }
 0x804   : > { %1706 = vrot.lane.b32.xlu1 %v1699_v14, %s2859_s22 }
 0x807   : > { %1708 = vrot.lane.b32.xlu0 %v1700_v15, %s2859_s22  ;;  %s2867_s22 = smov 99  }
 0x875   : > { %v1705_v16 = vpop.permute.xlu0 %1704 }
 0x876   : > { %1715 = vst.msk [vmem:[#allocation2] sm:$0xff] %vm865_vm5, %v1705_v16  ;;  %v1707_v17 = vpop.permute.xlu1 %1706  ;;  %vm3573_vm5 = vmmov %vm3572_vm4 }
 0x877   : > { %v1710_v18 = vsel %vm859_vm15, %v1705_v16, %v1707_v17 }
 0x878   : > { %1716 = vst [vmem:[#allocation2 + $0x8] sm:$0xff] %v1710_v18 }
 0x879   : > { %v1709_v39 = vpop.permute.xlu0 %1708 }
 0x87a   : > { %v1711_v23 = vsel %vm859_vm15, %v1707_v17, %v1709_v39  ;;  %v1718_v39 = vld [vmem:[%s3475_s5] sm:$0xff] }
 0x87b   : > { %1717 = vst.msk [vmem:[#allocation2 + $0x10] sm:$0xff] %vm868_vm0, %v1711_v23  ;;  %vm3574_vm0 = vcmask 1031168  }
 0x87c   : > { %vm3575_vm15 = vmmov %vm3574_vm0 }
 0x87d   : > { %v1720_v42 = vld [vmem:[#allocation2] sm:$0xff] }
 0x87e   : > { %1737 = vrot.lane.b32.xlu1 %v1720_v42, %s2848_s23  ;;  %1726 = vrot.lane.b32.xlu0 %v1720_v42, %s2849_s29 }
 0x882   : > { %1759 = vrot.lane.b32.xlu1 %v1720_v42, %s2851_s8  ;;  %1748 = vrot.lane.b32.xlu0 %v1720_v42, %s2852_s9  ;;  %v1722_v51 = vld [vmem:[#allocation2 + $0x10] sm:$0xff] }
 0x883   : > { %v2705_v25 = vpack.i.bf16 %v1722_v51, %v1710_v18 }
 0x886   : > { %1781 = vrot.lane.b32.xlu1 %v1720_v42, %s2853_s14  ;;  %1770 = vrot.lane.b32.xlu0 %v1720_v42, %s2854_s17 }
 0x88a   : > { %2706 = vrot.lane.b32.xlu0 %v2705_v25, %s2852_s9  ;;  %2696 = vrot.lane.b32.xlu1 %v2705_v25, %s2849_s29  ;;  %s2868_s9 = smov 89   ;;  %s2871_s29 = smov 85  }
 0x88e   : > { %2716 = vrot.lane.b32.xlu0 %v2705_v25, %s2854_s17  ;;  %2701 = vrot.lane.b32.xlu1 %v2705_v25, %s2848_s23  ;;  %s2861_s17 = smov 81   ;;  %s2870_s23 = smov 87  }
 0x892   : > { %2726 = vrot.lane.b32.xlu0 %v2705_v25, %s2855_s13  ;;  %2711 = vrot.lane.b32.xlu1 %v2705_v25, %s2851_s8 }
 0x896   : > { %1792 = vrot.lane.b32.xlu0 %v1720_v42, %s2855_s13  ;;  %2721 = vrot.lane.b32.xlu1 %v2705_v25, %s2853_s14  ;;  %s2860_s14 = smov 83  }
 0x89a   : > { %1807 = vrot.lane.b32.xlu0 %v1722_v51, %s2858_s15  ;;  %1805 = vrot.lane.b32.xlu1 %v1710_v18, %s2858_s15 }
 0x89e   : > { %1816 = vperm.xlu0 %2624, %v1719_v26   ;;  %1803 = vrot.lane.b32.xlu1 %v1720_v42, %s2858_s15  ;;  %s2862_s15 = smov 105  }
 0x8f0   : > { %v1738_v27 = vpop.permute.xlu1 %1737  ;;  %v1727_v31 = vpop.permute.xlu0 %1726 }
 0x8f4   : > { %v1760_v32 = vpop.permute.xlu1 %1759  ;;  %v1749_v33 = vpop.permute.xlu0 %1748 }
 0x8f8   : > { %v1782_v34 = vpop.permute.xlu1 %1781  ;;  %v1771_v35 = vpop.permute.xlu0 %1770 }
 0x8fc   : > { %v2697_v36 = vpop.permute.xlu1 %2696  ;;  %v2707_v37 = vpop.permute.xlu0 %2706 }
 0x8fd   : > { %v2699_v38 = vunpack.i.h.bf16 %v2697_v36  ;;  %v2698_v40 = vunpack.i.l.bf16 %v2697_v36  ;;  %v2709_v41 = vunpack.i.h.bf16 %v2707_v37  ;;  %v2708_v43 = vunpack.i.l.bf16 %v2707_v37 }
 0x8ff   : > { %v2447_v44 = vpack.c.bf16 %v2699_v38, %v1722_v51  ;;  %v1732_v45 = vsel %vm3570_vm3, %v1727_v31, %v2698_v40  ;;  %v1733_v46 = vsel %vm3571_vm6, %v2698_v40, %v2699_v38  ;;  %v1754_v53 = vsel %vm3572_vm4, %v1749_v33, %v2708_v43 }
 0x900   : > { %v2432_v47 = vpack.c.bf16 %v1732_v45, %v1720_v42  ;;  %v2702_v48 = vpop.permute.xlu1 %2701  ;;  %v2717_v49 = vpop.permute.xlu0 %2716  ;;  %v2430_v50 = vpack.c.bf16 %v1733_v46, %v1710_v18  ;;  %v1755_v55 = vsel %vm3573_vm5, %v2708_v43, %v2709_v41  ;;  %vm3586_vm3 = vcmask 588800  }
 0x901   : > { %v2704_v24 = vunpack.i.h.bf16 %v2702_v48  ;;  %v2703_v52 = vunpack.i.l.bf16 %v2702_v48  ;;  %2448 = vmatpush3.bf16.msra.mxu1 %v2447_v44  ;;  %v2718_v54 = vunpack.i.l.bf16 %v2717_v49  ;;  %v2719_v58 = vunpack.i.h.bf16 %v2717_v49  ;;  %vm3587_vm6 = vmmov %vm3586_vm3 }
 0x902   : > { %2431 = vmatprep.subr.bf16.mxu0 %v2430_v50  ;;  %2449 = vmatprep.subr.bf16.mxu1 %v2850_v20  ;;  %vm3588_vm4 = vcmask 130048   ;;  %vm2023_vm5 = vcmask 261120  }
 0x903   : > { %v1743_v56 = vsel %vm3574_vm0, %v1738_v27, %v2703_v52  ;;  %v2450_v57 = vpack.c.bf16 %v2709_v41, %v2704_v24  ;;  %2433 = vmatpush1.bf16.msra.mxu0 %v2432_v47  ;;  %v1744_v59 = vsel %vm3575_vm15, %v2703_v52, %v2704_v24  ;;  %v1776_v3 = vsel %vm3576_vm1, %v1771_v35, %v2718_v54  ;;  %vm3589_vm0 = vmmov %vm3588_vm4 }
 0x904   : > { %v2436_v60 = vpack.c.bf16 %v1754_v53, %v1743_v56  ;;  %v2712_v61 = vpop.permute.xlu1 %2711  ;;  %v2727_v62 = vpop.permute.xlu0 %2726  ;;  %v2434_v63 = vpack.c.bf16 %v1755_v55, %v1744_v59  ;;  %v1777_v9 = vsel %vm3579_vm11, %v2718_v54, %v2719_v58  ;;  %vm2013_vm15 = vcmask 678912  }
 0x905   : > { %v2714_v1 = vunpack.i.h.bf16 %v2712_v61  ;;  %v2713_v2 = vunpack.i.l.bf16 %v2712_v61  ;;  %2451 = vmatpush3.bf16.msra.mxu1 %v2450_v57  ;;  %v2729_v4 = vunpack.i.h.bf16 %v2727_v62  ;;  %v2728_v5 = vunpack.i.l.bf16 %v2727_v62 }
 0x906   : > { %2435 = vmatprep.subr.bf16.mxu0 %v2434_v63  ;;  %2452 = vmatprep.subr.bf16.mxu1 %v2850_v20  ;;  %vm2025_vm1 = vcmask 392192   ;;  %vm2031_vm11 = vcmask 785408  }
 0x907   : > { %v1765_v6 = vsel %vm3577_vm2, %v1760_v32, %v2713_v2  ;;  %v2453_v7 = vpack.c.bf16 %v2719_v58, %v2714_v1  ;;  %2437 = vmatpush1.bf16.msra.mxu0 %v2436_v60  ;;  %v1766_v8 = vsel %vm3578_vm10, %v2713_v2, %v2714_v1  ;;  %v1799_v29 = vsel %vm3580_vm8, %v2728_v5, %v2729_v4 }
 0x908   : > { %v2440_v10 = vpack.c.bf16 %v1776_v3, %v1765_v6  ;;  %v2722_v11 = vpop.permute.xlu1 %2721  ;;  %v1793_v30 = vpop.permute.xlu0 %1792  ;;  %v2438_v28 = vpack.c.bf16 %v1777_v9, %v1766_v8  ;;  %vm2027_vm2 = vcmask 523264   ;;  %vm1987_vm10 = vcmask 793600   ;;  %v2730_v8 = vld [vmem:[%s3007_s19 + $0x8] sm:$0xff] }
 0x909   : > { %v2724_v21 = vunpack.i.h.bf16 %v2722_v11  ;;  %v2723_v19 = vunpack.i.l.bf16 %v2722_v11  ;;  %2454 = vmatpush3.bf16.msra.mxu1 %v2453_v7  ;;  %v1798_v22 = vsel %vm3582_vm7, %v1793_v30, %v2728_v5  ;;  %vm2029_vm8 = vcmask 654336   ;;  %v2731_v11 = vld [vmem:[%s3007_s19] sm:$0xff]  ;;  %s2874_s19 = smov [#allocation7]  }
 0x90a   : > { %2439 = vmatprep.subr.bf16.mxu0 %v2438_v28  ;;  %2455 = vmatprep.subr.bf16.mxu1 %v2850_v20 }
 0x90b   : > { %v2456_v12 = vpack.c.bf16 %v2729_v4, %v2724_v21  ;;  %v1787_v13 = vsel %vm3581_vm12, %v1782_v34, %v2723_v19  ;;  %2441 = vmatpush1.bf16.msra.mxu0 %v2440_v10  ;;  %v1788_v14 = vsel %vm3583_vm13, %v2723_v19, %v2724_v21  ;;  %vm2033_vm12 = vcmask 916480  }
 0x90c   : > { %v2444_v15 = vpack.c.bf16 %v1798_v22, %v1787_v13  ;;  %v1806_v16 = vpop.permute.xlu1 %1805  ;;  %v1808_v17 = vpop.permute.xlu0 %1807  ;;  %v2442_v18 = vpack.c.bf16 %v1799_v29, %v1788_v14 }
 0x90d   : > { %2457 = vmatpush3.bf16.msra.mxu1 %v2456_v12  ;;  %v1810_v20 = vsel %vm3584_vm14, %v1806_v16, %v1808_v17 }
 0x90e   : > { %2443 = vmatprep.subr.bf16.mxu0 %v2442_v18  ;;  %2313 = vmatprep.subr.mxu1 %v2831_v0 }
 0x90f   : > { %2445 = vmatpush1.bf16.msra.mxu0 %v2444_v15 }
 0x910   : > { %v1804_v23 = vpop.permute.xlu1 %1803  ;;  %1838 = vmatprep.subr.mxu0 %v1810_v20 }
 0x911   : > { %v1809_v42 = vsel %vm3585_vm9, %v1804_v23, %v1806_v16  ;;  %2314 = vmatpush3.msra.mxu1 %v1808_v17 }
 0x912   : > { %2316 = vmatmul.mubr.msk.f32.vlgmr.msra.gmra.mrb[8].mxu1 %vm3586_vm3, %v1718_v39 }
 0x913   : > { %1839 = vmatpush1.msra.mxu0 %v1809_v42 }
 0x914   : > { %2154 = vmatmul.mubr.msk.f32.vlgmr.msra.gmra.mrb[8].mxu0 %vm3587_vm6, %v1718_v39 }
 0x91d   : > { %v1817_v51 = vpop.permute.xlu0 %1816 }
 0x9e5   : > { %v1959_v25 = vpop.f32.mrb[8].mxu1 }
 0x9e6   : > { %v1960_v0 = vadd.f32 %v1959_v25, %v1817_v51  ;;  %v2317_v26 = vpop.f32.mrb[9].mxu1 }
 0x9e7   : > { %v1888_v27 = vpop.f32.mrb[8].mxu0 }
 0x9e8   : > { %v1889_v31 = vadd.f32 %v1888_v27, %v1817_v51  ;;  %2011 = vrot.lane.b32.xlu0 %v1960_v0, %s2860_s14  ;;  %v1890_v32 = vpop.f32.mrb[9].mxu0 }
 0x9e9   : > { %v1891_v33 = vadd.f32 %v1890_v32, %v1817_v51 }
 0x9ea   : > { %1964 = vrot.lane.b32.xlu1 %v1889_v31, %s2851_s8  ;;  %s2869_s8 = smov 93  }
 0x9ec   : > { %2016 = vrot.lane.b32.xlu0 %v1960_v0, %s2861_s17  ;;  %s2872_s17 = smov 79  }
 0x9ee   : > { %1970 = vrot.lane.b32.xlu1 %v1889_v31, %s2862_s15  ;;  %s2873_s15 = smov 95  }
 0x9f0   : > { %1967 = vrot.lane.b32.xlu0 %v1889_v31, %s2863_s16  ;;  %s2162_s16 = sshll.u32 %s2936_s28, 8 }
 0x9f2   : > { %1973 = vrot.lane.b32.xlu1 %v1889_v31, %s2864_s18 }
 0x9f4   : > { %1983 = vrot.lane.b32.xlu0 %v1889_v31, %s2865_s20 }
 0x9f6   : > { %1976 = vrot.lane.b32.xlu1 %v1889_v31, %s2866_s21 }
 0x9f8   : > { %1996 = vrot.lane.b32.xlu0 %v1891_v33, %s2855_s13  ;;  %s284_s13 = sand.u32 1, %s2818_s25  }
 0x9f9   : > { %s2049_s28 = scalar_lea.sflag [#allocation6], %s284_s13 }
 0x9fa   : > { %1979 = vrot.lane.b32.xlu1 %v1889_v31, %s2867_s22 }
 0x9fc   : > { %1999 = vrot.lane.b32.xlu0 %v1891_v33, %s2868_s9  ;;  %s3426_s9 = scalar_lea.hbm %s3477_s7, %s2162_s16 }
 0x9fe   : > { %1993 = vrot.lane.b32.xlu1 %v1891_v33, %s2869_s8 }
 0xa00   : > { %2002 = vrot.lane.b32.xlu0 %v1891_v33, %s2870_s23  ;;  %s2764_s23 = sshll.u32 %s2874_s19, 4  ;;  %s2765_s23 = int_to_ptr.vmem [resolvable:$false] %s2764_s23 }
 0xa02   : > { %2009 = vrot.lane.b32.xlu1 %v1891_v33, %s2860_s14  ;;  %s2140_s14 = sshll.u32 %s284_s13, 4 }
 0xa03   : > { %s286_s18 = scalar_lea.vmem [#allocation7], %s2140_s14 }
 0xa04   : > { %2005 = vrot.lane.b32.xlu0 %v1891_v33, %s2871_s29  ;;  %s2766_s29 = scalar_lea.vmem %s2765_s23, 512 }
 0xa06   : > { %1985 = vrot.lane.b32.xlu1 %v1891_v33, %s2865_s20  ;;  %s2063_s20 = sshll.u32 %s286_s18, 4  ;;  %s3428_s20 = int_to_ptr.vmem [resolvable:$true] %s2063_s20 }
 0xa07   : > { %s2760_s8 = scalar_lea.vmem %s3428_s20, 256  ;;  %p2767_p2 = scmp.lt.s32.totalorder %s3428_s20, %s2765_s23 }
 0xa08   : > { %2019 = vrot.lane.b32.xlu0 %v1960_v0, %s2872_s17  ;;  %p2761_p6 = scmp.ne.s32.totalorder %s3428_s20, %s2760_s8  ;;  %p2768_p3 = scmp.lt.s32.totalorder %s2766_s29, %s2760_s8 }
 0xa0a   : > { %1990 = vrot.lane.b32.xlu1 %v1891_v33, %s2873_s15  ;;  %p2762_p10 = pnand %p2761_p6, %p3590_p9  ;;  %p2769_p4 = por %p2768_p3, %p2767_p2 }
 0xa0c   : > { %p2763_p12 = pneg %p2762_p10 }
 0xa0e   : > { %p2770_p7 = pnand %p2769_p4, %p2763_p12 }
 0xa5a   : > { %v2012_v34 = vpop.permute.xlu0 %2011 }
 0xa5c   : > { %v1965_v35 = vpop.permute.xlu1 %1964 }
 0xa5e   : > { %v2017_v36 = vpop.permute.xlu0 %2016 }
 0xa60   : > { %v1971_v37 = vpop.permute.xlu1 %1970 }
 0xa62   : > { %v1968_v38 = vpop.permute.xlu0 %1967 }
 0xa63   : > { %v2022_v50 = vsel %vm3589_vm0, %v1965_v35, %v1968_v38 }
 0xa64   : > { %v1974_v40 = vpop.permute.xlu1 %1973  ;;  %v2024_v53 = vsel %vm2023_vm5, %v2022_v50, %v1971_v37 }
 0xa65   : > { %v2026_v60 = vsel %vm2025_vm1, %v2024_v53, %v1974_v40 }
 0xa66   : > { %v1984_v41 = vpop.permute.xlu0 %1983 }
 0xa68   : > { %v1977_v43 = vpop.permute.xlu1 %1976 }
 0xa69   : > { %v2028_v63 = vsel %vm2027_vm2, %v2026_v60, %v1977_v43 }
 0xa6a   : > { %v1997_v44 = vpop.permute.xlu0 %1996 }
 0xa6c   : > { %v1980_v45 = vpop.permute.xlu1 %1979 }
 0xa6d   : > { %v2030_v2 = vsel %vm2029_vm8, %v2028_v63, %v1980_v45 }
 0xa6e   : > { %v2000_v46 = vpop.permute.xlu0 %1999 }
 0xa70   : > { %v1994_v47 = vpop.permute.xlu1 %1993 }
 0xa71   : > { %v2035_v48 = vsel %vm3588_vm4, %v1994_v47, %v1997_v44 }
 0xa72   : > { %v2003_v49 = vpop.permute.xlu0 %2002  ;;  %v2036_v24 = vsel %vm2023_vm5, %v2035_v48, %v2000_v46 }
 0xa73   : > { %v2037_v54 = vsel %vm2025_vm1, %v2036_v24, %v2003_v49 }
 0xa74   : > { %v2010_v52 = vpop.permute.xlu1 %2009 }
 0xa75   : > { %v2014_v56 = vsel %vm2013_vm15, %v2010_v52, %v2012_v34 }
 0xa76   : > { %v2006_v55 = vpop.permute.xlu0 %2005 }
 0xa77   : > { %v2038_v57 = vsel %vm2027_vm2, %v2037_v54, %v2006_v55 }
 0xa78   : > { %v2039_v58 = vsel %vm2029_vm8, %v2038_v57, %v2014_v56  ;;  %v1986_v59 = vpop.permute.xlu1 %1985 }
 0xa79   : > { %v1988_v61 = vsel %vm1987_vm10, %v1984_v41, %v1986_v59  ;;  %v2040_v62 = vsel %vm2031_vm11, %v2039_v58, %v2017_v36 }
 0xa7a   : > { %v2020_v1 = vpop.permute.xlu0 %2019  ;;  %v2032_v5 = vsel %vm2031_vm11, %v2030_v2, %v1988_v61 }
 0xa7b   : > { %v2041_v3 = vsel %vm2033_vm12, %v2040_v62, %v2020_v1 }
 0xa7c   : > { %v2043_v4 = vmul.f32 0.1, %v2041_v3  ;;  %v1991_v6 = vpop.permute.xlu1 %1990 }
 0xa7d   : > { %v2034_v7 = vsel %vm2033_vm12, %v2032_v5, %v1991_v6 }
 0xa7e   : > { %v2045_v9 = vadd.f32 %v2730_v8, %v2043_v4  ;;  %v2042_v10 = vmul.f32 0.1, %v2034_v7 }
 0xa80   : > { %v2044_v30 = vadd.f32 %v2731_v11, %v2042_v10  ;;  %2047 = vst [vmem:[%s286_s18 + $0x8] sm:$0xff] %v2045_v9 }
 0xa82   : > { %2046 = vst [vmem:[%s286_s18] sm:$0xff] %v2044_v30 }
 0xa83   : > { %2773 = shalt.err (!%p2770_p7)
}
 0xa84   : > { %s2774_s17 = scalar_lea.hbm %s3426_s9, 256  ;;  %s2778_s14 = scalar_lea.hbm %s3477_s7, 512 }
 0xa85   : > { %p2775_p8 = scmp.ne.s32.totalorder %s3426_s9, %s2774_s17  ;;  %p2779_p1 = scmp.lt.u32.totalorder %s3426_s9, %s3477_s7 }
 0xa86   : > { %p2780_p0 = scmp.lt.u32.totalorder %s2778_s14, %s2774_s17  ;;  %p2782_p6 = scmp.lt.u32.totalorder %s2774_s17, %s3426_s9 }
 0xa87   : > { %p2776_p11 = pnand %p2775_p8, %p3590_p9 }
 0xa88   : > { %p2781_p5 = por %p2780_p0, %p2779_p1 }
 0xa89   : > { %p2777_p13 = pneg %p2776_p11 }
 0xa8a   : > { %p2783_p10 = por %p2782_p6, %p2781_p5 }
 0xa8c   : > { %p2784_p12 = pnand %p2783_p10, %p2777_p13 }
 0xa8e   : > { %2787 = shalt.err (!%p2784_p12)
}
 0xa8f   : > { %2462 = dma.vmem_to_hbm [thread:$0]  (%p3590_p9), %s3428_s20, 256, %s3426_s9, %s2049_s28  }
 0xa90 PF: > { %p2474_p2 = scmp.ge.s32.totalorder %s2826_s27, 2  ;;  %s2075_s21 = sand.u32 1, %s2814_s24  }
 0xa91   : > { %p3591_p3 = scmp.ne.s32.totalorder %s3494_s12, 0  ;;  %s2076_s22 = scalar_lea.sflag [#allocation6], %s2075_s21 }
 0xa93   : > { %p2469_p4 = pnand %p2474_p2, %p3591_p3 }
 0xa95   : > { %2809 = dma.done.wait (!%p2469_p4), %s2076_s22, 256  }
 0xa96   : > { %2811 = vsyncadd (!%p2469_p4), %s2076_s22, 4294967040  ;;  %p18_p7 = scmp.ge.s32.totalorder %s2940_s30, 4   ;;  %s3592_s24 = smov %s2818_s25 }
 0xa97   : > { %s3593_s25 = smov %s2822_s26  ;;  %s3594_s26 = smov %s2951_s10 }
 0xa98   : > { %s3595_s27 = smov %s2940_s30  ;;  %20 = sbr.rel (!%p18_p7) target bundleno = 4 (0x4), region = 92 }
 0xa9f   :  { %2081 = vsyncpa [#allocation5], 1 }
 0xaa0   :  { %2083 = vsyncpa [#allocation5 + $0x1], 1 }
 0xaa1   :  { %2084 = vsyncpa [#allocation6], 1 }
 0xaa2   :  { %2086 = vsyncpa [#allocation6 + $0x1], 1 }

</bundles_post_ra>
